<compile_context>
chip_gen: v5e
topology: v5e:2x2
jax: 0.10.0
libtpu: 0.0.40
codegen_flags: <defaults>
</compile_context>

<pallas_src>
import math
from functools import partial

import jax
import jax.numpy as jnp
from jax.experimental import pallas as pl
from jax.experimental.pallas import tpu as pltpu


# ------------------------------------------------------------------ in-kernel pieces
def _attention(q_parts, k_parts, v_parts):
    """q/k/v_parts: matching-order lists of tb*H 2D (rows, d) head tiles.

    Returns (tb*H, nq, d) attention outputs (scores already scaled via pre-scaled K).
    """
    q_bh = jnp.stack(q_parts, axis=0)
    k_bh = jnp.stack(k_parts, axis=0)
    v_bh = jnp.stack(v_parts, axis=0)
    s = jnp.einsum("bqd,bkd->bqk", q_bh, k_bh, preferred_element_type=jnp.float32)
    s = s - jnp.max(s, axis=-1, keepdims=True)
    e = jnp.exp(s)
    a = e * pl.reciprocal(jnp.sum(e, axis=-1, keepdims=True), approx=True)
    return jnp.einsum("bqk,bkd->bqd", a, v_bh, preferred_element_type=jnp.float32)


def _merge_heads(o_bh, tb, num_heads):
    """(tb*H, nq, d) -> (tb*nq, H*d): concat over heads (lanes), then over batch (rows)."""
    rows = [jnp.concatenate([o_bh[b * num_heads + h] for h in range(num_heads)], axis=-1)
            for b in range(tb)]
    return jnp.concatenate(rows, axis=0) if tb > 1 else rows[0]


def _mab_tail(q2d, o_cat, wo, bo):
    """O = Q + concat_heads(attn);  return O + relu(O @ Wo + bo)."""
    o = q2d + o_cat
    ff = jnp.dot(o, wo, preferred_element_type=jnp.float32) + bo
    return o + jnp.maximum(ff, 0.0)


def _sab(x2d, wqkv, bqkv, wo, bo, tb, n, num_heads):
    """Self-attention block on (tb*n, Din) rows. wqkv: (Din, 3*dv), K-part pre-scaled."""
    dv = wo.shape[0]
    d = dv // num_heads
    qkv = jnp.dot(x2d, wqkv, preferred_element_type=jnp.float32) + bqkv   # (tb*n, 3dv)
    q = qkv[:, :dv]
    k = qkv[:, dv:2 * dv]
    v = qkv[:, 2 * dv:]

    def parts(m):
        return [m[b * n:(b + 1) * n, h * d:(h + 1) * d]
                for b in range(tb) for h in range(num_heads)]

    o_bh = _attention(parts(q), parts(k), parts(v))
    o_cat = _merge_heads(o_bh, tb, num_heads)
    return _mab_tail(q, o_cat, wo, bo)


def _pma(x2d, q_seed, wkv, bkv, wo, bo, tb, n, num_outputs, num_heads):
    """PMA: batch-independent seed queries (precomputed) attend over the set rows."""
    dv = wo.shape[0]
    d = dv // num_heads
    kv = jnp.dot(x2d, wkv, preferred_element_type=jnp.float32) + bkv      # (tb*n, 2dv)
    k = kv[:, :dv]
    v = kv[:, dv:]

    def kv_parts(m):
        return [m[b * n:(b + 1) * n, h * d:(h + 1) * d]
                for b in range(tb) for h in range(num_heads)]

    q_parts = [q_seed[:, h * d:(h + 1) * d]
               for _ in range(tb) for h in range(num_heads)]
    o_bh = _attention(q_parts, kv_parts(k), kv_parts(v))
    o_cat = _merge_heads(o_bh, tb, num_heads)
    q2d = jnp.concatenate([q_seed] * tb, axis=0) if tb > 1 else q_seed
    return _mab_tail(q2d, o_cat, wo, bo)


# --------------------------------------------------------------------- fused kernel
def _fused_kernel(x_ref,
                  wqkv1_ref, bqkv1_ref, wo1_ref, bo1_ref,
                  wqkv2_ref, bqkv2_ref, wo2_ref, bo2_ref,
                  qseed_ref, wkv3_ref, bkv3_ref, wo3_ref, bo3_ref,
                  wdec_ref, bdec_ref,
                  out_ref, *, num_heads, tb, n, num_outputs):
    # Fold the tb batch elements into the matmul M dimension (rows).
    if tb == 1:
        x2d = x_ref[0]
    else:
        x2d = jnp.concatenate([x_ref[b] for b in range(tb)], axis=0)      # (tb*n, Din)

    # enc: SAB -> SAB (intermediates never leave VMEM / the kernel)
    h = _sab(x2d, wqkv1_ref[...], bqkv1_ref[...], wo1_ref[...], bo1_ref[...],
             tb, n, num_heads)
    h = _sab(h, wqkv2_ref[...], bqkv2_ref[...], wo2_ref[...], bo2_ref[...],
             tb, n, num_heads)
    # dec: PMA + final Linear, fused
    h = _pma(h, qseed_ref[...], wkv3_ref[...], bkv3_ref[...], wo3_ref[...], bo3_ref[...],
             tb, n, num_outputs, num_heads)
    y = jnp.dot(h, wdec_ref[...], preferred_element_type=jnp.float32) + bdec_ref[...]
    out_ref[...] = jnp.stack(
        [y[b * num_outputs:(b + 1) * num_outputs] for b in range(tb)],
        axis=0).astype(out_ref.dtype)


def _const_spec(arr):
    """Whole-array block with a constant index_map (single resident VMEM copy)."""
    zeros = (0,) * arr.ndim
    return pl.BlockSpec(arr.shape, lambda b, zeros=zeros: zeros)


# -------------------------------------------------------------- weight packing (JAX)
def _pack_sab(p, scale):
    """[Wq | Wk*scale | Wv] fused projection; scale folded into K (scores only)."""
    w = jnp.concatenate([p["wq"], p["wk"] * scale, p["wv"]], axis=1)      # (Din, 3dv)
    b = jnp.concatenate([p["bq"], p["bk"] * scale, p["bv"]], axis=1)      # (1, 3dv)
    return w, b, p["wo"], p["bo"]


def _pack_pma(p, seeds, scale):
    """Seed queries are batch-independent: compute them once outside the kernel."""
    wkv = jnp.concatenate([p["wk"] * scale, p["wv"]], axis=1)             # (dv, 2dv)
    bkv = jnp.concatenate([p["bk"] * scale, p["bv"]], axis=1)             # (1, 2dv)
    q_seed = seeds @ p["wq"] + p["bq"]                                    # (no, dv)
    return q_seed, wkv, bkv, p["wo"], p["bo"]


def _choose_batch_block(b_sz, n):
    """Batch-block size: fill the matmul M dim, keep >=2 grid steps (v7x 2 TCs)."""
    if b_sz <= 1:
        return 1
    tb = max(1, 128 // max(n, 1))
    tb = max(1, min(tb, b_sz // 2))
    while b_sz % tb != 0:          # keep blocks exact (no padded tail)
        tb -= 1
    return tb


# ------------------------------------------------------------------------- forward
def set_transformer_forward(params, x, mask, num_heads=4):
    # mask is accepted but unused (matches the PyTorch forward).
    del mask
    b_sz, n, din = x.shape
    dv = params["sab1"]["wq"].shape[1]
    num_outputs = params["pma_S"].shape[0]
    out_dim = params["dec_w"].shape[1]
    scale = 1.0 / math.sqrt(dv)    # Set Transformer scales scores by 1/sqrt(dim_V)

    w1, b1, wo1, bo1 = _pack_sab(params["sab1"], scale)
    w2, b2, wo2, bo2 = _pack_sab(params["sab2"], scale)
    q_seed, wkv3, bkv3, wo3, bo3 = _pack_pma(params["pma_mab"], params["pma_S"], scale)

    tb = _choose_batch_block(b_sz, n)
    grid = b_sz // tb

    operands = [x,
                w1, b1, wo1, bo1,
                w2, b2, wo2, bo2,
                q_seed, wkv3, bkv3, wo3, bo3,
                params["dec_w"], params["dec_b"]]

    in_specs = ([pl.BlockSpec((tb, n, din), lambda b: (b, 0, 0))]
                + [_const_spec(a) for a in operands[1:]])

    kernel = partial(_fused_kernel, num_heads=num_heads, tb=tb, n=n,
                     num_outputs=num_outputs)

    out = pl.pallas_call(
        kernel,
        out_shape=jax.ShapeDtypeStruct((b_sz, num_outputs, out_dim), jnp.float32),
        grid=(grid,),
        in_specs=in_specs,
        out_specs=pl.BlockSpec((tb, num_outputs, out_dim), lambda b: (b, 0, 0)),
        compiler_params=pltpu.CompilerParams(
            dimension_semantics=("parallel",),    # batch blocks shard across v7x TCs
        ),
    )(*operands)

    # x.squeeze(dim=-1): only squeezes if last dim == 1 (as in PyTorch).
    if out.shape[-1] == 1:
        out = out[..., 0]
    return out


# -------------------------------------------------------------------------- params
def _init_linear(key, din, dout):
    kw, kb = jax.random.split(key)
    w = jax.random.normal(kw, (din, dout), jnp.float32) * (1.0 / math.sqrt(din))
    b = jax.random.normal(kb, (1, dout), jnp.float32) * 0.01
    return w, b


def _init_mab(key, dim_q, dim_k, dim_v):
    ks = jax.random.split(key, 4)
    p = {}
    p["wq"], p["bq"] = _init_linear(ks[0], dim_q, dim_v)
    p["wk"], p["bk"] = _init_linear(ks[1], dim_k, dim_v)
    p["wv"], p["bv"] = _init_linear(ks[2], dim_k, dim_v)
    p["wo"], p["bo"] = _init_linear(ks[3], dim_v, dim_v)
    return p


def init_set_transformer(key, input_dim, num_outputs, output_dim,
                         hidden_dim=128, num_heads=4):
    ks = jax.random.split(key, 5)
    lim = math.sqrt(6.0 / (num_outputs + hidden_dim))
    params = {
        "sab1": _init_mab(ks[0], input_dim, input_dim, hidden_dim),
        "sab2": _init_mab(ks[1], hidden_dim, hidden_dim, hidden_dim),
        "pma_mab": _init_mab(ks[2], hidden_dim, hidden_dim, hidden_dim),
        "pma_S": jax.random.uniform(ks[3], (num_outputs, hidden_dim), jnp.float32,
                                    minval=-lim, maxval=lim),
    }
    params["dec_w"], params["dec_b"] = _init_linear(ks[4], hidden_dim, output_dim)
    return params


# -------------------------------------------------------------------- pure-JAX ref
def _mab_ref(xq, xk, p, num_heads):
    q = xq @ p["wq"] + p["bq"]
    k = xk @ p["wk"] + p["bk"]
    v = xk @ p["wv"] + p["bv"]
    dim_v = q.shape[-1]
    d = dim_v // num_heads
    outs = []
    for h in range(num_heads):
        qh, kh, vh = (t[..., h * d:(h + 1) * d] for t in (q, k, v))
        a = jax.nn.softmax(
            jnp.einsum("bqd,bkd->bqk", qh, kh) / math.sqrt(dim_v), axis=-1)
        outs.append(qh + jnp.einsum("bqk,bkd->bqd", a, vh))
    o = jnp.concatenate(outs, axis=-1)
    return o + jax.nn.relu(o @ p["wo"] + p["bo"])


def _ref_forward(params, x, num_heads=4):
    b_sz = x.shape[0]
    h = _mab_ref(x, x, params["sab1"], num_heads)
    h = _mab_ref(h, h, params["sab2"], num_heads)
    seeds = jnp.broadcast_to(params["pma_S"][None], (b_sz,) + params["pma_S"].shape)
    h = _mab_ref(seeds, h, params["pma_mab"], num_heads)
    out = h @ params["dec_w"] + params["dec_b"]
    if out.shape[-1] == 1:
        out = out[..., 0]
    return out


# ----------------------------------------------------------------------------- main
if __name__ == "__main__":
    # small shapes: batch=2, set size=8, input_dim=4, hidden=32, heads=4,
    # num_outputs=4, output_dim=1
    B, N, INPUT_DIM = 2, 8, 4
    HIDDEN, HEADS, NUM_OUTPUTS, OUTPUT_DIM = 32, 4, 4, 1

    key = jax.random.PRNGKey(0)
    kx, kp = jax.random.split(key)
    x = jax.random.normal(kx, (B, N, INPUT_DIM), jnp.float32)
    mask = jnp.ones((B, N), jnp.float32)  # unused, as in the PyTorch module

    params = init_set_transformer(kp, INPUT_DIM, NUM_OUTPUTS, OUTPUT_DIM,
                                  hidden_dim=HIDDEN, num_heads=HEADS)

    out = set_transformer_forward(params, x, mask, num_heads=HEADS)
    out = jax.block_until_ready(out)
    assert out.shape == (B, NUM_OUTPUTS), out.shape

    ref = _ref_forward(params, x, num_heads=HEADS)
    # Tolerance absorbs the EUP approximate reciprocal in the softmax denominator
    # (pl.reciprocal(..., approx=True)); structural bugs would produce O(1) errors.
    max_err = float(jnp.max(jnp.abs(out - ref)))
    assert jnp.allclose(out, ref, rtol=2e-2, atol=2e-2), (max_err, out, ref)

    print("KERNEL_OK")
</pallas_src>

<mosaic_0001>
module attributes {stable_mosaic.version = 11 : i64} {
  func.func @_fused_kernel(%arg0: i32, %arg1: memref<1x8x4xf32, #tpu.memory_space<vmem>>, %arg2: memref<4x96xf32, #tpu.memory_space<vmem>>, %arg3: memref<1x96xf32, #tpu.memory_space<vmem>>, %arg4: memref<32x32xf32, #tpu.memory_space<vmem>>, %arg5: memref<1x32xf32, #tpu.memory_space<vmem>>, %arg6: memref<32x96xf32, #tpu.memory_space<vmem>>, %arg7: memref<1x96xf32, #tpu.memory_space<vmem>>, %arg8: memref<32x32xf32, #tpu.memory_space<vmem>>, %arg9: memref<1x32xf32, #tpu.memory_space<vmem>>, %arg10: memref<4x32xf32, #tpu.memory_space<vmem>>, %arg11: memref<32x64xf32, #tpu.memory_space<vmem>>, %arg12: memref<1x64xf32, #tpu.memory_space<vmem>>, %arg13: memref<32x32xf32, #tpu.memory_space<vmem>>, %arg14: memref<1x32xf32, #tpu.memory_space<vmem>>, %arg15: memref<32x1xf32, #tpu.memory_space<vmem>>, %arg16: memref<1x1xf32, #tpu.memory_space<vmem>>, %arg17: memref<1x4x1xf32, #tpu.memory_space<vmem>>) attributes {dimension_semantics = [#tpu.dimension_semantics<parallel>], iteration_bounds = array<i64: 2>, scalar_prefetch = 0 : i64, scratch_operands = 0 : i64, tpu.core_type = #tpu.core_type<tc>, window_params = [{transform_indices = @transform_0, window_bounds = array<i64: 1, 8, 4>}, {pipeline_mode = #tpu.pipeline_mode<synchronous>, transform_indices = @transform_1, window_bounds = array<i64: 4, 96>}, {pipeline_mode = #tpu.pipeline_mode<synchronous>, transform_indices = @transform_2, window_bounds = array<i64: 1, 96>}, {pipeline_mode = #tpu.pipeline_mode<synchronous>, transform_indices = @transform_3, window_bounds = array<i64: 32, 32>}, {pipeline_mode = #tpu.pipeline_mode<synchronous>, transform_indices = @transform_4, window_bounds = array<i64: 1, 32>}, {pipeline_mode = #tpu.pipeline_mode<synchronous>, transform_indices = @transform_5, window_bounds = array<i64: 32, 96>}, {pipeline_mode = #tpu.pipeline_mode<synchronous>, transform_indices = @transform_6, window_bounds = array<i64: 1, 96>}, {pipeline_mode = #tpu.pipeline_mode<synchronous>, transform_indices = @transform_7, window_bounds = array<i64: 32, 32>}, {pipeline_mode = #tpu.pipeline_mode<synchronous>, transform_indices = @transform_8, window_bounds = array<i64: 1, 32>}, {pipeline_mode = #tpu.pipeline_mode<synchronous>, transform_indices = @transform_9, window_bounds = array<i64: 4, 32>}, {pipeline_mode = #tpu.pipeline_mode<synchronous>, transform_indices = @transform_10, window_bounds = array<i64: 32, 64>}, {pipeline_mode = #tpu.pipeline_mode<synchronous>, transform_indices = @transform_11, window_bounds = array<i64: 1, 64>}, {pipeline_mode = #tpu.pipeline_mode<synchronous>, transform_indices = @transform_12, window_bounds = array<i64: 32, 32>}, {pipeline_mode = #tpu.pipeline_mode<synchronous>, transform_indices = @transform_13, window_bounds = array<i64: 1, 32>}, {pipeline_mode = #tpu.pipeline_mode<synchronous>, transform_indices = @transform_14, window_bounds = array<i64: 32, 1>}, {pipeline_mode = #tpu.pipeline_mode<synchronous>, transform_indices = @transform_15, window_bounds = array<i64: 1, 1>}, {transform_indices = @transform_16, window_bounds = array<i64: 1, 4, 1>}]} {
    %c0 = arith.constant 0 : index
    %c0_0 = arith.constant 0 : index
    %c0_1 = arith.constant 0 : index
    %0 = vector.load %arg1[%c0, %c0_0, %c0_1] : memref<1x8x4xf32, #tpu.memory_space<vmem>>, vector<1x8x4xf32>
    %1 = vector.shape_cast %0 : vector<1x8x4xf32> to vector<8x4xf32>
    %c0_2 = arith.constant 0 : index
    %c0_3 = arith.constant 0 : index
    %2 = vector.load %arg2[%c0_2, %c0_3] : memref<4x96xf32, #tpu.memory_space<vmem>>, vector<4x96xf32>
    %c0_4 = arith.constant 0 : index
    %c0_5 = arith.constant 0 : index
    %3 = vector.load %arg3[%c0_4, %c0_5] : memref<1x96xf32, #tpu.memory_space<vmem>>, vector<1x96xf32>
    %c0_6 = arith.constant 0 : index
    %c0_7 = arith.constant 0 : index
    %4 = vector.load %arg4[%c0_6, %c0_7] : memref<32x32xf32, #tpu.memory_space<vmem>>, vector<32x32xf32>
    %c0_8 = arith.constant 0 : index
    %c0_9 = arith.constant 0 : index
    %5 = vector.load %arg5[%c0_8, %c0_9] : memref<1x32xf32, #tpu.memory_space<vmem>>, vector<1x32xf32>
    %cst = arith.constant dense<0.000000e+00> : vector<8x96xf32>
    %6 = tpu.matmul %1, %2, %cst {dimension_numbers = #tpu.dot_dimension_numbers<[1], [0], [0], [1], [0, 0, 1, 1], [], []>} : vector<8x4xf32>, vector<4x96xf32>, vector<8x96xf32> -> vector<8x96xf32>
    %7 = vector.broadcast %3 : vector<1x96xf32> to vector<8x96xf32>
    %8 = arith.addf %6, %7 : vector<8x96xf32>
    %9 = vector.extract_strided_slice %8 {offsets = [0, 0], sizes = [8, 32], strides = [1, 1]} : vector<8x96xf32> to vector<8x32xf32>
    %10 = vector.extract_strided_slice %8 {offsets = [0, 32], sizes = [8, 32], strides = [1, 1]} : vector<8x96xf32> to vector<8x32xf32>
    %11 = vector.extract_strided_slice %8 {offsets = [0, 64], sizes = [8, 32], strides = [1, 1]} : vector<8x96xf32> to vector<8x32xf32>
    %12 = vector.extract_strided_slice %9 {offsets = [0, 0], sizes = [8, 8], strides = [1, 1]} : vector<8x32xf32> to vector<8x8xf32>
    %13 = vector.extract_strided_slice %9 {offsets = [0, 8], sizes = [8, 8], strides = [1, 1]} : vector<8x32xf32> to vector<8x8xf32>
    %14 = vector.extract_strided_slice %9 {offsets = [0, 16], sizes = [8, 8], strides = [1, 1]} : vector<8x32xf32> to vector<8x8xf32>
    %15 = vector.extract_strided_slice %9 {offsets = [0, 24], sizes = [8, 8], strides = [1, 1]} : vector<8x32xf32> to vector<8x8xf32>
    %16 = vector.extract_strided_slice %10 {offsets = [0, 0], sizes = [8, 8], strides = [1, 1]} : vector<8x32xf32> to vector<8x8xf32>
    %17 = vector.extract_strided_slice %10 {offsets = [0, 8], sizes = [8, 8], strides = [1, 1]} : vector<8x32xf32> to vector<8x8xf32>
    %18 = vector.extract_strided_slice %10 {offsets = [0, 16], sizes = [8, 8], strides = [1, 1]} : vector<8x32xf32> to vector<8x8xf32>
    %19 = vector.extract_strided_slice %10 {offsets = [0, 24], sizes = [8, 8], strides = [1, 1]} : vector<8x32xf32> to vector<8x8xf32>
    %20 = vector.extract_strided_slice %11 {offsets = [0, 0], sizes = [8, 8], strides = [1, 1]} : vector<8x32xf32> to vector<8x8xf32>
    %21 = vector.extract_strided_slice %11 {offsets = [0, 8], sizes = [8, 8], strides = [1, 1]} : vector<8x32xf32> to vector<8x8xf32>
    %22 = vector.extract_strided_slice %11 {offsets = [0, 16], sizes = [8, 8], strides = [1, 1]} : vector<8x32xf32> to vector<8x8xf32>
    %23 = vector.extract_strided_slice %11 {offsets = [0, 24], sizes = [8, 8], strides = [1, 1]} : vector<8x32xf32> to vector<8x8xf32>
    %24 = vector.shape_cast %12 : vector<8x8xf32> to vector<1x8x8xf32>
    %25 = vector.shape_cast %13 : vector<8x8xf32> to vector<1x8x8xf32>
    %26 = vector.shape_cast %14 : vector<8x8xf32> to vector<1x8x8xf32>
    %27 = vector.shape_cast %15 : vector<8x8xf32> to vector<1x8x8xf32>
    %28 = tpu.concatenate %24, %25, %26, %27 in 0 : vector<1x8x8xf32>, vector<1x8x8xf32>, vector<1x8x8xf32>, vector<1x8x8xf32> -> vector<4x8x8xf32>
    %29 = vector.shape_cast %16 : vector<8x8xf32> to vector<1x8x8xf32>
    %30 = vector.shape_cast %17 : vector<8x8xf32> to vector<1x8x8xf32>
    %31 = vector.shape_cast %18 : vector<8x8xf32> to vector<1x8x8xf32>
    %32 = vector.shape_cast %19 : vector<8x8xf32> to vector<1x8x8xf32>
    %33 = tpu.concatenate %29, %30, %31, %32 in 0 : vector<1x8x8xf32>, vector<1x8x8xf32>, vector<1x8x8xf32>, vector<1x8x8xf32> -> vector<4x8x8xf32>
    %34 = vector.shape_cast %20 : vector<8x8xf32> to vector<1x8x8xf32>
    %35 = vector.shape_cast %21 : vector<8x8xf32> to vector<1x8x8xf32>
    %36 = vector.shape_cast %22 : vector<8x8xf32> to vector<1x8x8xf32>
    %37 = vector.shape_cast %23 : vector<8x8xf32> to vector<1x8x8xf32>
    %38 = tpu.concatenate %34, %35, %36, %37 in 0 : vector<1x8x8xf32>, vector<1x8x8xf32>, vector<1x8x8xf32>, vector<1x8x8xf32> -> vector<4x8x8xf32>
    "tpu.trace_start"() <{level = 10 : i32, message = "bqd,bkd->bqk"}> : () -> ()
    %cst_10 = arith.constant dense<0.000000e+00> : vector<4x8x8xf32>
    %39 = tpu.matmul %28, %33, %cst_10 {dimension_numbers = #tpu.dot_dimension_numbers<[2], [2], [1], [1], [0, 0, 0, 1, 1, 1], [0], [0]>} : vector<4x8x8xf32>, vector<4x8x8xf32>, vector<4x8x8xf32> -> vector<4x8x8xf32>
    "tpu.trace_stop"() : () -> ()
    %cst_11 = arith.constant dense<0xFF800000> : vector<4x8xf32>
    %40 = vector.multi_reduction <maximumf>, %39, %cst_11 [2] : vector<4x8x8xf32> to vector<4x8xf32>
    %41 = vector.shape_cast %40 : vector<4x8xf32> to vector<4x8x1xf32>
    %42 = vector.broadcast %41 : vector<4x8x1xf32> to vector<4x8x8xf32>
    %43 = arith.subf %39, %42 : vector<4x8x8xf32>
    %44 = math.exp %43 : vector<4x8x8xf32>
    %cst_12 = arith.constant dense<0.000000e+00> : vector<4x8xf32>
    %45 = vector.multi_reduction <add>, %44, %cst_12 [2] : vector<4x8x8xf32> to vector<4x8xf32>
    %46 = vector.shape_cast %45 : vector<4x8xf32> to vector<4x8x1xf32>
    %47 = tpu.reciprocal %46 {approx = true} : vector<4x8x1xf32> -> vector<4x8x1xf32>
    %48 = vector.broadcast %47 : vector<4x8x1xf32> to vector<4x8x8xf32>
    %49 = arith.mulf %44, %48 : vector<4x8x8xf32>
    "tpu.trace_start"() <{level = 10 : i32, message = "bqk,bkd->bqd"}> : () -> ()
    %cst_13 = arith.constant dense<0.000000e+00> : vector<4x8x8xf32>
    %50 = tpu.matmul %49, %38, %cst_13 {dimension_numbers = #tpu.dot_dimension_numbers<[2], [1], [1], [2], [0, 0, 0, 1, 1, 2], [0], [0]>} : vector<4x8x8xf32>, vector<4x8x8xf32>, vector<4x8x8xf32> -> vector<4x8x8xf32>
    "tpu.trace_stop"() : () -> ()
    %51 = vector.extract_strided_slice %50 {offsets = [0, 0, 0], sizes = [1, 8, 8], strides = [1, 1, 1]} : vector<4x8x8xf32> to vector<1x8x8xf32>
    %52 = vector.shape_cast %51 : vector<1x8x8xf32> to vector<8x8xf32>
    %53 = vector.extract_strided_slice %50 {offsets = [1, 0, 0], sizes = [1, 8, 8], strides = [1, 1, 1]} : vector<4x8x8xf32> to vector<1x8x8xf32>
    %54 = vector.shape_cast %53 : vector<1x8x8xf32> to vector<8x8xf32>
    %55 = vector.extract_strided_slice %50 {offsets = [2, 0, 0], sizes = [1, 8, 8], strides = [1, 1, 1]} : vector<4x8x8xf32> to vector<1x8x8xf32>
    %56 = vector.shape_cast %55 : vector<1x8x8xf32> to vector<8x8xf32>
    %57 = vector.extract_strided_slice %50 {offsets = [3, 0, 0], sizes = [1, 8, 8], strides = [1, 1, 1]} : vector<4x8x8xf32> to vector<1x8x8xf32>
    %58 = vector.shape_cast %57 : vector<1x8x8xf32> to vector<8x8xf32>
    %59 = tpu.concatenate %52, %54, %56, %58 in 1 : vector<8x8xf32>, vector<8x8xf32>, vector<8x8xf32>, vector<8x8xf32> -> vector<8x32xf32>
    %60 = arith.addf %9, %59 : vector<8x32xf32>
    %cst_14 = arith.constant dense<0.000000e+00> : vector<8x32xf32>
    %61 = tpu.matmul %60, %4, %cst_14 {dimension_numbers = #tpu.dot_dimension_numbers<[1], [0], [0], [1], [0, 0, 1, 1], [], []>} : vector<8x32xf32>, vector<32x32xf32>, vector<8x32xf32> -> vector<8x32xf32>
    %62 = vector.broadcast %5 : vector<1x32xf32> to vector<8x32xf32>
    %63 = arith.addf %61, %62 : vector<8x32xf32>
    %cst_15 = arith.constant 0.000000e+00 : f32
    %64 = vector.broadcast %cst_15 : f32 to vector<8x32xf32>
    %65 = arith.maximumf %63, %64 : vector<8x32xf32>
    %66 = arith.addf %60, %65 : vector<8x32xf32>
    %c0_16 = arith.constant 0 : index
    %c0_17 = arith.constant 0 : index
    %67 = vector.load %arg6[%c0_16, %c0_17] : memref<32x96xf32, #tpu.memory_space<vmem>>, vector<32x96xf32>
    %c0_18 = arith.constant 0 : index
    %c0_19 = arith.constant 0 : index
    %68 = vector.load %arg7[%c0_18, %c0_19] : memref<1x96xf32, #tpu.memory_space<vmem>>, vector<1x96xf32>
    %c0_20 = arith.constant 0 : index
    %c0_21 = arith.constant 0 : index
    %69 = vector.load %arg8[%c0_20, %c0_21] : memref<32x32xf32, #tpu.memory_space<vmem>>, vector<32x32xf32>
    %c0_22 = arith.constant 0 : index
    %c0_23 = arith.constant 0 : index
    %70 = vector.load %arg9[%c0_22, %c0_23] : memref<1x32xf32, #tpu.memory_space<vmem>>, vector<1x32xf32>
    %cst_24 = arith.constant dense<0.000000e+00> : vector<8x96xf32>
    %71 = tpu.matmul %66, %67, %cst_24 {dimension_numbers = #tpu.dot_dimension_numbers<[1], [0], [0], [1], [0, 0, 1, 1], [], []>} : vector<8x32xf32>, vector<32x96xf32>, vector<8x96xf32> -> vector<8x96xf32>
    %72 = vector.broadcast %68 : vector<1x96xf32> to vector<8x96xf32>
    %73 = arith.addf %71, %72 : vector<8x96xf32>
    %74 = vector.extract_strided_slice %73 {offsets = [0, 0], sizes = [8, 32], strides = [1, 1]} : vector<8x96xf32> to vector<8x32xf32>
    %75 = vector.extract_strided_slice %73 {offsets = [0, 32], sizes = [8, 32], strides = [1, 1]} : vector<8x96xf32> to vector<8x32xf32>
    %76 = vector.extract_strided_slice %73 {offsets = [0, 64], sizes = [8, 32], strides = [1, 1]} : vector<8x96xf32> to vector<8x32xf32>
    %77 = vector.extract_strided_slice %74 {offsets = [0, 0], sizes = [8, 8], strides = [1, 1]} : vector<8x32xf32> to vector<8x8xf32>
    %78 = vector.extract_strided_slice %74 {offsets = [0, 8], sizes = [8, 8], strides = [1, 1]} : vector<8x32xf32> to vector<8x8xf32>
    %79 = vector.extract_strided_slice %74 {offsets = [0, 16], sizes = [8, 8], strides = [1, 1]} : vector<8x32xf32> to vector<8x8xf32>
    %80 = vector.extract_strided_slice %74 {offsets = [0, 24], sizes = [8, 8], strides = [1, 1]} : vector<8x32xf32> to vector<8x8xf32>
    %81 = vector.extract_strided_slice %75 {offsets = [0, 0], sizes = [8, 8], strides = [1, 1]} : vector<8x32xf32> to vector<8x8xf32>
    %82 = vector.extract_strided_slice %75 {offsets = [0, 8], sizes = [8, 8], strides = [1, 1]} : vector<8x32xf32> to vector<8x8xf32>
    %83 = vector.extract_strided_slice %75 {offsets = [0, 16], sizes = [8, 8], strides = [1, 1]} : vector<8x32xf32> to vector<8x8xf32>
    %84 = vector.extract_strided_slice %75 {offsets = [0, 24], sizes = [8, 8], strides = [1, 1]} : vector<8x32xf32> to vector<8x8xf32>
    %85 = vector.extract_strided_slice %76 {offsets = [0, 0], sizes = [8, 8], strides = [1, 1]} : vector<8x32xf32> to vector<8x8xf32>
    %86 = vector.extract_strided_slice %76 {offsets = [0, 8], sizes = [8, 8], strides = [1, 1]} : vector<8x32xf32> to vector<8x8xf32>
    %87 = vector.extract_strided_slice %76 {offsets = [0, 16], sizes = [8, 8], strides = [1, 1]} : vector<8x32xf32> to vector<8x8xf32>
    %88 = vector.extract_strided_slice %76 {offsets = [0, 24], sizes = [8, 8], strides = [1, 1]} : vector<8x32xf32> to vector<8x8xf32>
    %89 = vector.shape_cast %77 : vector<8x8xf32> to vector<1x8x8xf32>
    %90 = vector.shape_cast %78 : vector<8x8xf32> to vector<1x8x8xf32>
    %91 = vector.shape_cast %79 : vector<8x8xf32> to vector<1x8x8xf32>
    %92 = vector.shape_cast %80 : vector<8x8xf32> to vector<1x8x8xf32>
    %93 = tpu.concatenate %89, %90, %91, %92 in 0 : vector<1x8x8xf32>, vector<1x8x8xf32>, vector<1x8x8xf32>, vector<1x8x8xf32> -> vector<4x8x8xf32>
    %94 = vector.shape_cast %81 : vector<8x8xf32> to vector<1x8x8xf32>
    %95 = vector.shape_cast %82 : vector<8x8xf32> to vector<1x8x8xf32>
    %96 = vector.shape_cast %83 : vector<8x8xf32> to vector<1x8x8xf32>
    %97 = vector.shape_cast %84 : vector<8x8xf32> to vector<1x8x8xf32>
    %98 = tpu.concatenate %94, %95, %96, %97 in 0 : vector<1x8x8xf32>, vector<1x8x8xf32>, vector<1x8x8xf32>, vector<1x8x8xf32> -> vector<4x8x8xf32>
    %99 = vector.shape_cast %85 : vector<8x8xf32> to vector<1x8x8xf32>
    %100 = vector.shape_cast %86 : vector<8x8xf32> to vector<1x8x8xf32>
    %101 = vector.shape_cast %87 : vector<8x8xf32> to vector<1x8x8xf32>
    %102 = vector.shape_cast %88 : vector<8x8xf32> to vector<1x8x8xf32>
    %103 = tpu.concatenate %99, %100, %101, %102 in 0 : vector<1x8x8xf32>, vector<1x8x8xf32>, vector<1x8x8xf32>, vector<1x8x8xf32> -> vector<4x8x8xf32>
    "tpu.trace_start"() <{level = 10 : i32, message = "bqd,bkd->bqk"}> : () -> ()
    %cst_25 = arith.constant dense<0.000000e+00> : vector<4x8x8xf32>
    %104 = tpu.matmul %93, %98, %cst_25 {dimension_numbers = #tpu.dot_dimension_numbers<[2], [2], [1], [1], [0, 0, 0, 1, 1, 1], [0], [0]>} : vector<4x8x8xf32>, vector<4x8x8xf32>, vector<4x8x8xf32> -> vector<4x8x8xf32>
    "tpu.trace_stop"() : () -> ()
    %cst_26 = arith.constant dense<0xFF800000> : vector<4x8xf32>
    %105 = vector.multi_reduction <maximumf>, %104, %cst_26 [2] : vector<4x8x8xf32> to vector<4x8xf32>
    %106 = vector.shape_cast %105 : vector<4x8xf32> to vector<4x8x1xf32>
    %107 = vector.broadcast %106 : vector<4x8x1xf32> to vector<4x8x8xf32>
    %108 = arith.subf %104, %107 : vector<4x8x8xf32>
    %109 = math.exp %108 : vector<4x8x8xf32>
    %cst_27 = arith.constant dense<0.000000e+00> : vector<4x8xf32>
    %110 = vector.multi_reduction <add>, %109, %cst_27 [2] : vector<4x8x8xf32> to vector<4x8xf32>
    %111 = vector.shape_cast %110 : vector<4x8xf32> to vector<4x8x1xf32>
    %112 = tpu.reciprocal %111 {approx = true} : vector<4x8x1xf32> -> vector<4x8x1xf32>
    %113 = vector.broadcast %112 : vector<4x8x1xf32> to vector<4x8x8xf32>
    %114 = arith.mulf %109, %113 : vector<4x8x8xf32>
    "tpu.trace_start"() <{level = 10 : i32, message = "bqk,bkd->bqd"}> : () -> ()
    %cst_28 = arith.constant dense<0.000000e+00> : vector<4x8x8xf32>
    %115 = tpu.matmul %114, %103, %cst_28 {dimension_numbers = #tpu.dot_dimension_numbers<[2], [1], [1], [2], [0, 0, 0, 1, 1, 2], [0], [0]>} : vector<4x8x8xf32>, vector<4x8x8xf32>, vector<4x8x8xf32> -> vector<4x8x8xf32>
    "tpu.trace_stop"() : () -> ()
    %116 = vector.extract_strided_slice %115 {offsets = [0, 0, 0], sizes = [1, 8, 8], strides = [1, 1, 1]} : vector<4x8x8xf32> to vector<1x8x8xf32>
    %117 = vector.shape_cast %116 : vector<1x8x8xf32> to vector<8x8xf32>
    %118 = vector.extract_strided_slice %115 {offsets = [1, 0, 0], sizes = [1, 8, 8], strides = [1, 1, 1]} : vector<4x8x8xf32> to vector<1x8x8xf32>
    %119 = vector.shape_cast %118 : vector<1x8x8xf32> to vector<8x8xf32>
    %120 = vector.extract_strided_slice %115 {offsets = [2, 0, 0], sizes = [1, 8, 8], strides = [1, 1, 1]} : vector<4x8x8xf32> to vector<1x8x8xf32>
    %121 = vector.shape_cast %120 : vector<1x8x8xf32> to vector<8x8xf32>
    %122 = vector.extract_strided_slice %115 {offsets = [3, 0, 0], sizes = [1, 8, 8], strides = [1, 1, 1]} : vector<4x8x8xf32> to vector<1x8x8xf32>
    %123 = vector.shape_cast %122 : vector<1x8x8xf32> to vector<8x8xf32>
    %124 = tpu.concatenate %117, %119, %121, %123 in 1 : vector<8x8xf32>, vector<8x8xf32>, vector<8x8xf32>, vector<8x8xf32> -> vector<8x32xf32>
    %125 = arith.addf %74, %124 : vector<8x32xf32>
    %cst_29 = arith.constant dense<0.000000e+00> : vector<8x32xf32>
    %126 = tpu.matmul %125, %69, %cst_29 {dimension_numbers = #tpu.dot_dimension_numbers<[1], [0], [0], [1], [0, 0, 1, 1], [], []>} : vector<8x32xf32>, vector<32x32xf32>, vector<8x32xf32> -> vector<8x32xf32>
    %127 = vector.broadcast %70 : vector<1x32xf32> to vector<8x32xf32>
    %128 = arith.addf %126, %127 : vector<8x32xf32>
    %cst_30 = arith.constant 0.000000e+00 : f32
    %129 = vector.broadcast %cst_30 : f32 to vector<8x32xf32>
    %130 = arith.maximumf %128, %129 : vector<8x32xf32>
    %131 = arith.addf %125, %130 : vector<8x32xf32>
    %c0_31 = arith.constant 0 : index
    %c0_32 = arith.constant 0 : index
    %132 = vector.load %arg10[%c0_31, %c0_32] : memref<4x32xf32, #tpu.memory_space<vmem>>, vector<4x32xf32>
    %c0_33 = arith.constant 0 : index
    %c0_34 = arith.constant 0 : index
    %133 = vector.load %arg11[%c0_33, %c0_34] : memref<32x64xf32, #tpu.memory_space<vmem>>, vector<32x64xf32>
    %c0_35 = arith.constant 0 : index
    %c0_36 = arith.constant 0 : index
    %134 = vector.load %arg12[%c0_35, %c0_36] : memref<1x64xf32, #tpu.memory_space<vmem>>, vector<1x64xf32>
    %c0_37 = arith.constant 0 : index
    %c0_38 = arith.constant 0 : index
    %135 = vector.load %arg13[%c0_37, %c0_38] : memref<32x32xf32, #tpu.memory_space<vmem>>, vector<32x32xf32>
    %c0_39 = arith.constant 0 : index
    %c0_40 = arith.constant 0 : index
    %136 = vector.load %arg14[%c0_39, %c0_40] : memref<1x32xf32, #tpu.memory_space<vmem>>, vector<1x32xf32>
    %cst_41 = arith.constant dense<0.000000e+00> : vector<8x64xf32>
    %137 = tpu.matmul %131, %133, %cst_41 {dimension_numbers = #tpu.dot_dimension_numbers<[1], [0], [0], [1], [0, 0, 1, 1], [], []>} : vector<8x32xf32>, vector<32x64xf32>, vector<8x64xf32> -> vector<8x64xf32>
    %138 = vector.broadcast %134 : vector<1x64xf32> to vector<8x64xf32>
    %139 = arith.addf %137, %138 : vector<8x64xf32>
    %140 = vector.extract_strided_slice %139 {offsets = [0, 0], sizes = [8, 32], strides = [1, 1]} : vector<8x64xf32> to vector<8x32xf32>
    %141 = vector.extract_strided_slice %139 {offsets = [0, 32], sizes = [8, 32], strides = [1, 1]} : vector<8x64xf32> to vector<8x32xf32>
    %142 = vector.extract_strided_slice %132 {offsets = [0, 0], sizes = [4, 8], strides = [1, 1]} : vector<4x32xf32> to vector<4x8xf32>
    %143 = vector.extract_strided_slice %132 {offsets = [0, 8], sizes = [4, 8], strides = [1, 1]} : vector<4x32xf32> to vector<4x8xf32>
    %144 = vector.extract_strided_slice %132 {offsets = [0, 16], sizes = [4, 8], strides = [1, 1]} : vector<4x32xf32> to vector<4x8xf32>
    %145 = vector.extract_strided_slice %132 {offsets = [0, 24], sizes = [4, 8], strides = [1, 1]} : vector<4x32xf32> to vector<4x8xf32>
    %146 = vector.extract_strided_slice %140 {offsets = [0, 0], sizes = [8, 8], strides = [1, 1]} : vector<8x32xf32> to vector<8x8xf32>
    %147 = vector.extract_strided_slice %140 {offsets = [0, 8], sizes = [8, 8], strides = [1, 1]} : vector<8x32xf32> to vector<8x8xf32>
    %148 = vector.extract_strided_slice %140 {offsets = [0, 16], sizes = [8, 8], strides = [1, 1]} : vector<8x32xf32> to vector<8x8xf32>
    %149 = vector.extract_strided_slice %140 {offsets = [0, 24], sizes = [8, 8], strides = [1, 1]} : vector<8x32xf32> to vector<8x8xf32>
    %150 = vector.extract_strided_slice %141 {offsets = [0, 0], sizes = [8, 8], strides = [1, 1]} : vector<8x32xf32> to vector<8x8xf32>
    %151 = vector.extract_strided_slice %141 {offsets = [0, 8], sizes = [8, 8], strides = [1, 1]} : vector<8x32xf32> to vector<8x8xf32>
    %152 = vector.extract_strided_slice %141 {offsets = [0, 16], sizes = [8, 8], strides = [1, 1]} : vector<8x32xf32> to vector<8x8xf32>
    %153 = vector.extract_strided_slice %141 {offsets = [0, 24], sizes = [8, 8], strides = [1, 1]} : vector<8x32xf32> to vector<8x8xf32>
    %154 = vector.shape_cast %142 : vector<4x8xf32> to vector<1x4x8xf32>
    %155 = vector.shape_cast %143 : vector<4x8xf32> to vector<1x4x8xf32>
    %156 = vector.shape_cast %144 : vector<4x8xf32> to vector<1x4x8xf32>
    %157 = vector.shape_cast %145 : vector<4x8xf32> to vector<1x4x8xf32>
    %158 = tpu.concatenate %154, %155, %156, %157 in 0 : vector<1x4x8xf32>, vector<1x4x8xf32>, vector<1x4x8xf32>, vector<1x4x8xf32> -> vector<4x4x8xf32>
    %159 = vector.shape_cast %146 : vector<8x8xf32> to vector<1x8x8xf32>
    %160 = vector.shape_cast %147 : vector<8x8xf32> to vector<1x8x8xf32>
    %161 = vector.shape_cast %148 : vector<8x8xf32> to vector<1x8x8xf32>
    %162 = vector.shape_cast %149 : vector<8x8xf32> to vector<1x8x8xf32>
    %163 = tpu.concatenate %159, %160, %161, %162 in 0 : vector<1x8x8xf32>, vector<1x8x8xf32>, vector<1x8x8xf32>, vector<1x8x8xf32> -> vector<4x8x8xf32>
    %164 = vector.shape_cast %150 : vector<8x8xf32> to vector<1x8x8xf32>
    %165 = vector.shape_cast %151 : vector<8x8xf32> to vector<1x8x8xf32>
    %166 = vector.shape_cast %152 : vector<8x8xf32> to vector<1x8x8xf32>
    %167 = vector.shape_cast %153 : vector<8x8xf32> to vector<1x8x8xf32>
    %168 = tpu.concatenate %164, %165, %166, %167 in 0 : vector<1x8x8xf32>, vector<1x8x8xf32>, vector<1x8x8xf32>, vector<1x8x8xf32> -> vector<4x8x8xf32>
    "tpu.trace_start"() <{level = 10 : i32, message = "bqd,bkd->bqk"}> : () -> ()
    %cst_42 = arith.constant dense<0.000000e+00> : vector<4x4x8xf32>
    %169 = tpu.matmul %158, %163, %cst_42 {dimension_numbers = #tpu.dot_dimension_numbers<[2], [2], [1], [1], [0, 0, 0, 1, 1, 1], [0], [0]>} : vector<4x4x8xf32>, vector<4x8x8xf32>, vector<4x4x8xf32> -> vector<4x4x8xf32>
    "tpu.trace_stop"() : () -> ()
    %cst_43 = arith.constant dense<0xFF800000> : vector<4x4xf32>
    %170 = vector.multi_reduction <maximumf>, %169, %cst_43 [2] : vector<4x4x8xf32> to vector<4x4xf32>
    %171 = vector.shape_cast %170 : vector<4x4xf32> to vector<4x4x1xf32>
    %172 = vector.broadcast %171 : vector<4x4x1xf32> to vector<4x4x8xf32>
    %173 = arith.subf %169, %172 : vector<4x4x8xf32>
    %174 = math.exp %173 : vector<4x4x8xf32>
    %cst_44 = arith.constant dense<0.000000e+00> : vector<4x4xf32>
    %175 = vector.multi_reduction <add>, %174, %cst_44 [2] : vector<4x4x8xf32> to vector<4x4xf32>
    %176 = vector.shape_cast %175 : vector<4x4xf32> to vector<4x4x1xf32>
    %177 = tpu.reciprocal %176 {approx = true} : vector<4x4x1xf32> -> vector<4x4x1xf32>
    %178 = vector.broadcast %177 : vector<4x4x1xf32> to vector<4x4x8xf32>
    %179 = arith.mulf %174, %178 : vector<4x4x8xf32>
    "tpu.trace_start"() <{level = 10 : i32, message = "bqk,bkd->bqd"}> : () -> ()
    %cst_45 = arith.constant dense<0.000000e+00> : vector<4x4x8xf32>
    %180 = tpu.matmul %179, %168, %cst_45 {dimension_numbers = #tpu.dot_dimension_numbers<[2], [1], [1], [2], [0, 0, 0, 1, 1, 2], [0], [0]>} : vector<4x4x8xf32>, vector<4x8x8xf32>, vector<4x4x8xf32> -> vector<4x4x8xf32>
    "tpu.trace_stop"() : () -> ()
    %181 = vector.extract_strided_slice %180 {offsets = [0, 0, 0], sizes = [1, 4, 8], strides = [1, 1, 1]} : vector<4x4x8xf32> to vector<1x4x8xf32>
    %182 = vector.shape_cast %181 : vector<1x4x8xf32> to vector<4x8xf32>
    %183 = vector.extract_strided_slice %180 {offsets = [1, 0, 0], sizes = [1, 4, 8], strides = [1, 1, 1]} : vector<4x4x8xf32> to vector<1x4x8xf32>
    %184 = vector.shape_cast %183 : vector<1x4x8xf32> to vector<4x8xf32>
    %185 = vector.extract_strided_slice %180 {offsets = [2, 0, 0], sizes = [1, 4, 8], strides = [1, 1, 1]} : vector<4x4x8xf32> to vector<1x4x8xf32>
    %186 = vector.shape_cast %185 : vector<1x4x8xf32> to vector<4x8xf32>
    %187 = vector.extract_strided_slice %180 {offsets = [3, 0, 0], sizes = [1, 4, 8], strides = [1, 1, 1]} : vector<4x4x8xf32> to vector<1x4x8xf32>
    %188 = vector.shape_cast %187 : vector<1x4x8xf32> to vector<4x8xf32>
    %189 = tpu.concatenate %182, %184, %186, %188 in 1 : vector<4x8xf32>, vector<4x8xf32>, vector<4x8xf32>, vector<4x8xf32> -> vector<4x32xf32>
    %190 = arith.addf %132, %189 : vector<4x32xf32>
    %cst_46 = arith.constant dense<0.000000e+00> : vector<4x32xf32>
    %191 = tpu.matmul %190, %135, %cst_46 {dimension_numbers = #tpu.dot_dimension_numbers<[1], [0], [0], [1], [0, 0, 1, 1], [], []>} : vector<4x32xf32>, vector<32x32xf32>, vector<4x32xf32> -> vector<4x32xf32>
    %192 = vector.broadcast %136 : vector<1x32xf32> to vector<4x32xf32>
    %193 = arith.addf %191, %192 : vector<4x32xf32>
    %cst_47 = arith.constant 0.000000e+00 : f32
    %194 = vector.broadcast %cst_47 : f32 to vector<4x32xf32>
    %195 = arith.maximumf %193, %194 : vector<4x32xf32>
    %196 = arith.addf %190, %195 : vector<4x32xf32>
    %c0_48 = arith.constant 0 : index
    %c0_49 = arith.constant 0 : index
    %197 = vector.load %arg15[%c0_48, %c0_49] : memref<32x1xf32, #tpu.memory_space<vmem>>, vector<32x1xf32>
    %cst_50 = arith.constant dense<0.000000e+00> : vector<4x1xf32>
    %198 = tpu.matmul %196, %197, %cst_50 {dimension_numbers = #tpu.dot_dimension_numbers<[1], [0], [0], [1], [0, 0, 1, 1], [], []>} : vector<4x32xf32>, vector<32x1xf32>, vector<4x1xf32> -> vector<4x1xf32>
    %c0_51 = arith.constant 0 : index
    %c0_52 = arith.constant 0 : index
    %199 = vector.load %arg16[%c0_51, %c0_52] : memref<1x1xf32, #tpu.memory_space<vmem>>, vector<1x1xf32>
    %200 = vector.broadcast %199 : vector<1x1xf32> to vector<4x1xf32>
    %201 = arith.addf %198, %200 : vector<4x1xf32>
    %202 = vector.shape_cast %201 : vector<4x1xf32> to vector<1x4x1xf32>
    %c0_53 = arith.constant 0 : index
    %c0_54 = arith.constant 0 : index
    %c0_55 = arith.constant 0 : index
    %203 = vector.load %arg17[%c0_53, %c0_54, %c0_55] : memref<1x4x1xf32, #tpu.memory_space<vmem>>, vector<1x4x1xf32>
    tpu.vector_store %arg17[%c0_53, %c0_54, %c0_55], %202 {strides = array<i32>} : memref<1x4x1xf32, #tpu.memory_space<vmem>>, vector<1x4x1xf32>,
    return
  }
  func.func @transform_0(%arg0: i32) -> (i32, i32, i32) {
    %c0_i32 = arith.constant 0 : i32
    %c0_i32_0 = arith.constant 0 : i32
    %c0_i32_1 = arith.constant 0 : i32
    return %arg0, %c0_i32, %c0_i32_0 : i32, i32, i32
  }
  func.func @transform_1(%arg0: i32) -> (i32, i32) {
    %c0_i32 = arith.constant 0 : i32
    %c0_i32_0 = arith.constant 0 : i32
    %c0_i32_1 = arith.constant 0 : i32
    return %c0_i32, %c0_i32_0 : i32, i32
  }
  func.func @transform_2(%arg0: i32) -> (i32, i32) {
    %c0_i32 = arith.constant 0 : i32
    %c0_i32_0 = arith.constant 0 : i32
    %c0_i32_1 = arith.constant 0 : i32
    return %c0_i32, %c0_i32_0 : i32, i32
  }
  func.func @transform_3(%arg0: i32) -> (i32, i32) {
    %c0_i32 = arith.constant 0 : i32
    %c0_i32_0 = arith.constant 0 : i32
    %c0_i32_1 = arith.constant 0 : i32
    return %c0_i32, %c0_i32_0 : i32, i32
  }
  func.func @transform_4(%arg0: i32) -> (i32, i32) {
    %c0_i32 = arith.constant 0 : i32
    %c0_i32_0 = arith.constant 0 : i32
    %c0_i32_1 = arith.constant 0 : i32
    return %c0_i32, %c0_i32_0 : i32, i32
  }
  func.func @transform_5(%arg0: i32) -> (i32, i32) {
    %c0_i32 = arith.constant 0 : i32
    %c0_i32_0 = arith.constant 0 : i32
    %c0_i32_1 = arith.constant 0 : i32
    return %c0_i32, %c0_i32_0 : i32, i32
  }
  func.func @transform_6(%arg0: i32) -> (i32, i32) {
    %c0_i32 = arith.constant 0 : i32
    %c0_i32_0 = arith.constant 0 : i32
    %c0_i32_1 = arith.constant 0 : i32
    return %c0_i32, %c0_i32_0 : i32, i32
  }
  func.func @transform_7(%arg0: i32) -> (i32, i32) {
    %c0_i32 = arith.constant 0 : i32
    %c0_i32_0 = arith.constant 0 : i32
    %c0_i32_1 = arith.constant 0 : i32
    return %c0_i32, %c0_i32_0 : i32, i32
  }
  func.func @transform_8(%arg0: i32) -> (i32, i32) {
    %c0_i32 = arith.constant 0 : i32
    %c0_i32_0 = arith.constant 0 : i32
    %c0_i32_1 = arith.constant 0 : i32
    return %c0_i32, %c0_i32_0 : i32, i32
  }
  func.func @transform_9(%arg0: i32) -> (i32, i32) {
    %c0_i32 = arith.constant 0 : i32
    %c0_i32_0 = arith.constant 0 : i32
    %c0_i32_1 = arith.constant 0 : i32
    return %c0_i32, %c0_i32_0 : i32, i32
  }
  func.func @transform_10(%arg0: i32) -> (i32, i32) {
    %c0_i32 = arith.constant 0 : i32
    %c0_i32_0 = arith.constant 0 : i32
    %c0_i32_1 = arith.constant 0 : i32
    return %c0_i32, %c0_i32_0 : i32, i32
  }
  func.func @transform_11(%arg0: i32) -> (i32, i32) {
    %c0_i32 = arith.constant 0 : i32
    %c0_i32_0 = arith.constant 0 : i32
    %c0_i32_1 = arith.constant 0 : i32
    return %c0_i32, %c0_i32_0 : i32, i32
  }
  func.func @transform_12(%arg0: i32) -> (i32, i32) {
    %c0_i32 = arith.constant 0 : i32
    %c0_i32_0 = arith.constant 0 : i32
    %c0_i32_1 = arith.constant 0 : i32
    return %c0_i32, %c0_i32_0 : i32, i32
  }
  func.func @transform_13(%arg0: i32) -> (i32, i32) {
    %c0_i32 = arith.constant 0 : i32
    %c0_i32_0 = arith.constant 0 : i32
    %c0_i32_1 = arith.constant 0 : i32
    return %c0_i32, %c0_i32_0 : i32, i32
  }
  func.func @transform_14(%arg0: i32) -> (i32, i32) {
    %c0_i32 = arith.constant 0 : i32
    %c0_i32_0 = arith.constant 0 : i32
    %c0_i32_1 = arith.constant 0 : i32
    return %c0_i32, %c0_i32_0 : i32, i32
  }
  func.func @transform_15(%arg0: i32) -> (i32, i32) {
    %c0_i32 = arith.constant 0 : i32
    %c0_i32_0 = arith.constant 0 : i32
    %c0_i32_1 = arith.constant 0 : i32
    return %c0_i32, %c0_i32_0 : i32, i32
  }
  func.func @transform_16(%arg0: i32) -> (i32, i32, i32) {
    %c0_i32 = arith.constant 0 : i32
    %c0_i32_0 = arith.constant 0 : i32
    %c0_i32_1 = arith.constant 0 : i32
    return %arg0, %c0_i32, %c0_i32_0 : i32, i32, i32
  }
}

</mosaic_0001>

<bundles_post_ra>
// kernel: tpu_custom_call.1
= control target key start
LH: loop header
LB: loop body
LE: loop exit
PB: predicated region body
PF: predicated region fallthrough
CT: control target
= control target key end

     0   :  { %s2732_s0 = inlined_call_operand.vmem [shape: f32[2,8,4], index: 0, kind: input, shape index: {}]   ;;  %s2733_s1 = inlined_call_operand.hbm [shape: f32[4,96], index: 1, kind: input, shape index: {}]   ;;  %s2734_s2 = inlined_call_operand.vmem [shape: f32[1,96], index: 2, kind: input, shape index: {}]   ;;  %s2735_s3 = inlined_call_operand.vmem [shape: f32[32,32], index: 3, kind: input, shape index: {}]   ;;  %s2736_s4 = inlined_call_operand.hbm [shape: f32[1,32], index: 4, kind: input, shape index: {}]   ;;  %s2737_s5 = inlined_call_operand.hbm [shape: f32[32,96], index: 5, kind: input, shape index: {}]   ;;  %s2738_s6 = inlined_call_operand.hbm [shape: f32[1,96], index: 6, kind: input, shape index: {}]   ;;  %s2739_s7 = inlined_call_operand.hbm [shape: f32[32,32], index: 7, kind: input, shape index: {}]   ;;  %s2740_s8 = inlined_call_operand.hbm [shape: f32[1,32], index: 8, kind: input, shape index: {}]   ;;  %s2741_s9 = inlined_call_operand.hbm [shape: f32[4,32], index: 9, kind: input, shape index: {}]   ;;  %s2742_s10 = inlined_call_operand.vmem [shape: f32[32,64], index: 10, kind: input, shape index: {}]   ;;  %s2743_s11 = inlined_call_operand.vmem [shape: f32[1,64], index: 11, kind: input, shape index: {}]   ;;  %s2744_s12 = inlined_call_operand.hbm [shape: f32[32,32], index: 12, kind: input, shape index: {}]   ;;  %s2745_s13 = inlined_call_operand.vmem [shape: f32[1,32], index: 13, kind: input, shape index: {}]   ;;  %s2746_s14 = inlined_call_operand.vmem [shape: f32[32,1], index: 14, kind: input, shape index: {}]   ;;  %s2747_s15 = inlined_call_operand.<no memory space> [shape: f32[1,1], index: 15, kind: input, shape index: {}]   ;;  %s2748_s16 = inlined_call_operand.vmem [shape: f32[2,4,1], index: 16, kind: output, shape index: {}]  }
   0x1   :  { %2749 = sst [smem:[#allocation21_spill]] %s2732_s0  ;;  %v21_v0 = vstv %s2747_s15 }
   0x2   :  { %2750 = sst [smem:[#allocation22_spill]] %s2736_s4  ;;  %22 = vst [vmem:[#allocation2] sm:$0x1] %v21_v0 }
   0x3   :  { %2751 = sst [smem:[#allocation23_spill]] %s2738_s6 }
   0x4   :  { %2752 = sst [smem:[#allocation24_spill]] %s2740_s8 }
   0x5   :  { %23 = vsyncpa [#allocation4], 0 }
   0x6   :  { %24 = vsyncpa [#allocation6], 0 }
   0x7   :  { %25 = vsyncpa [#allocation9], 0 }
   0x8   :  { %26 = vsyncpa [#allocation12], 0 }
   0x9   :  { %27 = vsyncpa [#allocation15], 0  ;;  %s2444_s23 = smov 0  }
   0xa LB: > { %s2753_s4 = sld [smem:[#allocation22_spill]]  ;;  %s2453_s26 = sadd.s32 4294967295, %s2336_s23   ;;  %s2336_s23 = sphi %s2444_s23, %s33_s23  }
   0xb   : > { %p1834_p0 = scmp.ge.s32.totalorder %s2336_s23, 1  ;;  %p405_p1 = scmp.lt.s32.totalorder %s2336_s23, 3 }
   0xc   : > { %p1958_p2 = scmp.eq.s32.totalorder %s2453_s26, 0  ;;  %s2338_s28 = smov [#allocation5]  }
   0xd   : > { %p2458_p3 = pnand %p1834_p0, %p405_p1  ;;  %s437_s29 = sshll.u32 %s2338_s28, 4  ;;  %s438_s29 = int_to_ptr.vmem [resolvable:$true] %s437_s29 }
   0xe   : > { %s2755_s6 = sld [smem:[#allocation23_spill]]  ;;  %s2339_s22 = smov [#allocation8]  }
   0xf   : > { %p1933_p4 = pneg %p2458_p3  ;;  %s2756_s8 = sld [smem:[#allocation24_spill]] }
  0x10   : > { %s435_s15 = sshll.u32 %s2753_s4, 4  ;;  %s463_s24 = sshll.u32 %s2339_s22, 4  ;;  %s436_s15 = int_to_ptr.hbm [resolvable:$true] %s435_s15  ;;  %s464_s24 = int_to_ptr.vmem [resolvable:$true] %s463_s24 }
  0x11   : > { %p2472_p5 = pnand %p1958_p2, %p1933_p4  ;;  %s2340_s25 = smov [#allocation11]  }
  0x12   : > { %s489_s28 = sshll.u32 %s2340_s25, 4  ;;  %s417_s18 = sshll.u32 %s2733_s1, 4  ;;  %s490_s28 = int_to_ptr.vmem [resolvable:$true] %s489_s28  ;;  %s418_s18 = int_to_ptr.hbm [resolvable:$true] %s417_s18 }
  0x13   : > { %1939 = dma.hbm_to_vmem [thread:$0]  (!%p2472_p5), %s436_s15, 16, %s438_s29, [#allocation6]  }
  0x14   : > { %s461_s17 = sshll.u32 %s2755_s6, 4  ;;  %s446_s4 = sshll.u32 %s2737_s5, 4  ;;  %s462_s17 = int_to_ptr.hbm [resolvable:$true] %s461_s17  ;;  %s447_s4 = int_to_ptr.hbm [resolvable:$true] %s446_s4 }
  0x15   : > { %s487_s20 = sshll.u32 %s2756_s8, 4  ;;  %s2341_s6 = smov [#allocation3]   ;;  %s488_s20 = int_to_ptr.hbm [resolvable:$true] %s487_s20 }
  0x16   : > { %1945 = dma.hbm_to_vmem [thread:$0]  (!%p2472_p5), %s462_s17, 16, %s464_s24, [#allocation9]  }
  0x17   : > { %1951 = dma.hbm_to_vmem [thread:$0]  (!%p2472_p5), %s488_s20, 16, %s490_s28, [#allocation12]  }
  0x18   : > { %s419_s8 = sshll.u32 %s2341_s6, 4  ;;  %s2342_s15 = smov [#allocation7]   ;;  %s420_s8 = int_to_ptr.vmem [resolvable:$true] %s419_s8 }
  0x19   : > { %1936 = dma.hbm_to_vmem [thread:$0]  (!%p2472_p5), %s418_s18, 64, %s420_s8, [#allocation4]  }
  0x1a   : > { %s448_s29 = sshll.u32 %s2342_s15, 4  ;;  %s2343_s17 = smov 128   ;;  %s449_s29 = int_to_ptr.vmem [resolvable:$true] %s448_s29 }
  0x1b   : > { %s2344_s24 = smov 8   ;;  %s472_s28 = sshll.u32 %s2739_s7, 4  ;;  %s473_s28 = int_to_ptr.hbm [resolvable:$true] %s472_s28 }
  0x1c   : > { %1942 = dma.hbm_to_vmem [thread:$0]  (!%p2472_p5), %s447_s4, 512, %s449_s29, [#allocation6], %s2343_s17, %s2343_s17, %s2344_s24  }
  0x1d   : > { %s2345_s6 = smov [#allocation10]   ;;  %s499_s8 = sshll.u32 %s2741_s9, 4  ;;  %s500_s8 = int_to_ptr.hbm [resolvable:$true] %s499_s8 }
  0x1e   : > { %s474_s30 = sshll.u32 %s2345_s6, 4  ;;  %s2346_s18 = smov [#allocation13]   ;;  %s475_s30 = int_to_ptr.vmem [resolvable:$true] %s474_s30 }
  0x1f   : > { %1948 = dma.hbm_to_vmem [thread:$0]  (!%p2472_p5), %s473_s28, 512, %s475_s30, [#allocation9], %s2343_s17, %s2343_s17, %s2344_s24  }
  0x20   : > { %s501_s22 = sshll.u32 %s2346_s18, 4  ;;  %s516_s29 = sshll.u32 %s2744_s12, 4  ;;  %s502_s22 = int_to_ptr.vmem [resolvable:$true] %s501_s22  ;;  %s517_s29 = int_to_ptr.hbm [resolvable:$true] %s516_s29 }
  0x21   : > { %1954 = dma.hbm_to_vmem [thread:$0]  (!%p2472_p5), %s500_s8, 64, %s502_s22, [#allocation12]  }
  0x22   : > { %s2347_s20 = smov [#allocation14]   ;;  %550 = sbr.rel (%p2458_p3) target bundleno = 3532 (0xdcc), region = 84 }
  0x23   : > { %s518_s25 = sshll.u32 %s2347_s20, 4  ;;  %s519_s25 = int_to_ptr.vmem [resolvable:$true] %s518_s25 }
  0x24   : > { %1957 = dma.hbm_to_vmem [thread:$0]  (!%p2472_p5), %s517_s29, 512, %s519_s25, [#allocation15], %s2343_s17, %s2343_s17, %s2344_s24  }
  0x27   : > { %2315 = dma.done.wait (%p1958_p2), [#allocation4], 64  }
  0x28   : > { %2317 = vsyncadd (%p1958_p2), [#allocation4], 4294967232 }
  0x29   : > { %2319 = dma.done.wait (%p1958_p2), [#allocation6], 528  }
  0x2a   : > { %2321 = vsyncadd (%p1958_p2), [#allocation6], 4294966768 }
  0x2b   : > { %2323 = dma.done.wait (%p1958_p2), [#allocation9], 528  }
  0x2c   : > { %2325 = vsyncadd (%p1958_p2), [#allocation9], 4294966768 }
  0x2d   : > { %2327 = dma.done.wait (%p1958_p2), [#allocation12], 80  }
  0x2e   : > { %2329 = vsyncadd (%p1958_p2), [#allocation12], 4294967216 }
  0x2f   : > { %2331 = dma.done.wait (%p1958_p2), [#allocation15], 512  }
  0x30   : > { %2333 = vsyncadd (%p1958_p2), [#allocation15], 4294966784  ;;  %p634_p6 = scmp.lt.s32.totalorder %s2453_s26, 1  ;;  %vm657_vm0 = vcmask 1043456   ;;  %s2758_s24 = sld [smem:[#allocation21_spill]]  ;;  %vm653_vm1 = vcmask 31744  }
  0x31   : > { %v643_v1 = vld [vmem:[#allocation3] sm:$0xf]  ;;  %v2015_v3 = vld [vmem:[%s2734_s2] ss:$0 sm:$0xff]  ;;  %s2348_s0 = smov 104   ;;  %s2349_s19 = smov 120  }
  0x32   : > { %s2760_s26 = smov (!%p634_p6, %s2453_s26), 1  ;;  %1855 = vmatpush.msk.msra.mxu0 %vm657_vm0, %v643_v1  ;;  %s2350_s8 = smov 112   ;;  %vm690_vm2 = vcmask 64512   ;;  %v648_v62 = vld [vmem:[%s2735_s3 + $0x18] sm:$0xff]  ;;  %v647_v63 = vld [vmem:[%s2735_s3 + $0x10] sm:$0xff]  ;;  %v646_v0 = vld [vmem:[%s2735_s3 + $0x8] sm:$0xff] }
  0x33   : > { %s1853_s27 = sshll.u32 %s2760_s26, 3  ;;  %s2351_s18 = smov 96   ;;  %v645_v1 = vld [vmem:[%s2735_s3] sm:$0xff]  ;;  %vm954_vm3 = vcmask 130048   ;;  %vm956_vm4 = vcmask 195584   ;;  %vm962_vm5 = vcmask 261120  }
  0x34   : > { %s2352_s22 = smov 64   ;;  %s2353_s15 = smov 8   ;;  %vm1474_vm6 = vcmask 60416   ;;  %vm1698_vm7 = vcmask 3072  }
  0x35   : > { %s2354_s4 = smov 16   ;;  %s2355_s29 = smov 24  }
  0x36   : > { %s637_s28 = scalar_lea.vmem %s2758_s24, %s1853_s27  ;;  %s1854_s25 = sshll.u32 %s2760_s26, 2 }
  0x37   : > { %v642_v2 = vld [vmem:[%s637_s28] sm:$0xff]  ;;  %s641_s17 = scalar_lea.vmem %s2748_s16, %s1854_s25 }
  0x38   : > { %1856 = vmatmul.msk.f32.vlgmr.msra.gmra.mxu0 %vm653_vm1, %v642_v2 }
  0xb5   : > { %v678_v4 = vpop.f32.mrf.mxu0 }
  0xb6   : > { %v2540_v5 = vadd.f32 %v2015_v3, %v678_v4 }
  0xb8   : > { %686 = vrot.lane.b32.xlu1 %v2540_v5, %s2348_s0  ;;  %682 = vrot.lane.b32.xlu0 %v2540_v5, %s2349_s19 }
  0xc0   : > { %684 = vrot.lane.b32.xlu0 %v2540_v5, %s2350_s8 }
  0xc8   : > { %688 = vrot.lane.b32.xlu0 %v2540_v5, %s2351_s18 }
 0x12a   : > { %v2550_v6 = vpop.permute.xlu0 %682  ;;  %v687_v8 = vpop.permute.xlu1 %686 }
 0x12b   : > { %715 = vrot.lane.b32.xlu1 %v2550_v6, %s2351_s18 }
 0x132   : > { %v685_v7 = vpop.permute.xlu0 %684 }
 0x133   : > { %741 = vrot.lane.b32.xlu2 %v685_v7, %s2351_s18  ;;  %v2000_v41 = vpack.i.bf16 %v685_v7, %v2550_v6 }
 0x13a   : > { %v689_v9 = vpop.permute.xlu0 %688 }
 0x13b   : > { %1857 = vmatpush.xpose.msk.msra.mxu1 %vm690_vm2, %v689_v9  ;;  %767 = vrot.lane.b32.xlu2 %v687_v8, %s2351_s18 }
 0x13e   : > { %1858 = vmatmul.msk.f32.vlgmr.msra.gmra.mxu1 %vm690_vm2, %v2540_v5 }
 0x18d   : > { %v742_v10 = vpop.permute.xlu2 %741 }
 0x18e   : > { %1861 = vmatpush.xpose.msk.msra.mxu3 %vm690_vm2, %v742_v10 }
 0x191   : > { %1862 = vmatmul.msk.f32.vlgmr.msra.gmra.mxu3 %vm690_vm2, %v685_v7 }
 0x195   : > { %v768_v11 = vpop.permute.xlu2 %767 }
 0x196   : > { %1863 = vmatpush.xpose.msk.msrb.mxu0 %vm690_vm2, %v768_v11  ;;  %v991_v11 = vld [vmem:[#allocation7 + $0x18] sm:$0xff] }
 0x199   : > { %1864 = vmatmul.msk.f32.vlgmr.msrb.gmra.mxu0 %vm690_vm2, %v687_v8 }
 0x19d   : > { %v716_v12 = vpop.permute.xlu1 %715 }
 0x19e   : > { %1859 = vmatpush.xpose.msk.msra.mxu2 %vm690_vm2, %v716_v12  ;;  %v990_v12 = vld [vmem:[#allocation7 + $0x10] sm:$0xff] }
 0x1a1   : > { %1860 = vmatmul.msk.f32.vlgmr.msra.gmra.mxu2 %vm690_vm2, %v2550_v6 }
 0x1bb   : > { %v712_v17 = vpop.f32.mrf.mxu1 }
 0x1bc   : > { %v793_v18 = vsel %vm690_vm2, %v712_v17, -inf }
 0x214   : > { %v764_v13 = vpop.f32.mrf.mxu3 }
 0x215   : > { %v799_v14 = vsel %vm690_vm2, %v764_v13, -inf }
 0x216   : > { %800 = vmax.xlane.f32.xlu2 %v799_v14  ;;  %v790_v15 = vpop.f32.mrf.mxu0  ;;  %v988_v14 = vld [vmem:[#allocation7] sm:$0xff] }
 0x217   : > { %v802_v16 = vsel %vm690_vm2, %v790_v15, -inf }
 0x218   : > { %803 = vmax.xlane.f32.xlu0 %v802_v16 }
 0x21e   : > { %794 = vmax.xlane.f32.xlu2 %v793_v18 }
 0x224   : > { %v738_v19 = vpop.f32.mrf.mxu2 }
 0x225   : > { %v796_v20 = vsel %vm690_vm2, %v738_v19, -inf }
 0x226   : > { %797 = vmax.xlane.f32.xlu1 %v796_v20  ;;  %v2017_v20 = vld [vmem:[#allocation8] ss:$0 sm:$0xff] }
 0x289   : > { %v801_v21 = vpop.xlane.xlu2 %800 }
 0x28a   : > { %v807_v22 = vsub.f32 %v764_v13, %v801_v21  ;;  %v989_v13 = vld [vmem:[#allocation7 + $0x8] sm:$0xff] }
 0x28b   : > { %v804_v23 = vpop.xlane.xlu0 %803 }
 0x28c   : > { %v813_v24 = vmul.f32 1.442695, %v807_v22  ;;  %v808_v25 = vsub.f32 %v790_v15, %v804_v23  ;;  %v2016_v15 = vld [vmem:[#allocation5] ss:$0 sm:$0xff] }
 0x28e   : > { %2022 = vpow2.f32 %v813_v24  ;;  %v815_v26 = vmul.f32 1.442695, %v808_v25 }
 0x290   : > { %2024 = vpow2.f32 %v815_v26 }
 0x291   : > { %v795_v27 = vpop.xlane.xlu2 %794 }
 0x292   : > { %v805_v28 = vsub.f32 %v712_v17, %v795_v27 }
 0x294   : > { %v2023_v29 = vpop.eup %2022  ;;  %v809_v30 = vmul.f32 1.442695, %v805_v28 }
 0x295   : > { %v823_v31 = vsel %vm690_vm2, %v2023_v29, 0.0 }
 0x296   : > { %v2025_v32 = vpop.eup %2024  ;;  %2026 = vpow2.f32 %v809_v30  ;;  %824 = vadd.xlane.f32.xlu2 %v823_v31 }
 0x297   : > { %v826_v33 = vsel %vm690_vm2, %v2025_v32, 0.0 }
 0x298   : > { %827 = vadd.xlane.f32.xlu0 %v826_v33 }
 0x299   : > { %v798_v34 = vpop.xlane.xlu1 %797 }
 0x29a   : > { %v806_v35 = vsub.f32 %v738_v19, %v798_v34 }
 0x29c   : > { %v2027_v36 = vpop.eup %2026  ;;  %v811_v37 = vmul.f32 1.442695, %v806_v35 }
 0x29d   : > { %v817_v38 = vsel %vm690_vm2, %v2027_v36, 0.0 }
 0x29e   : > { %2028 = vpow2.f32 %v811_v37 }
 0x2a0   : > { %818 = vadd.xlane.f32.xlu0 %v817_v38 }
 0x2a4   : > { %v2029_v39 = vpop.eup %2028 }
 0x2a5   : > { %v820_v40 = vsel %vm690_vm2, %v2029_v39, 0.0 }
 0x2a6   : > { %821 = vadd.xlane.f32.xlu1 %v820_v40 }
 0x2ae   : > { %915 = vrot.lane.b32.xlu2 %v687_v8, %s2352_s22 }
 0x2b4   : > { %837 = vrot.lane.b32.xlu0 %v2540_v5, %s2352_s22 }
 0x2bf   : > { %2001 = vrot.lane.b32.xlu1 %v2000_v41, %s2352_s22 }
 0x309   : > { %v825_v42 = vpop.xlane.xlu2 %824 }
 0x30b   : > { %v828_v43 = vpop.xlane.xlu0 %827 }
 0x30c   : > { %2030 = vrcp.f32 %v828_v43 }
 0x311   : > { %v916_v44 = vpop.permute.xlu2 %915 }
 0x312   : > { %v2031_v45 = vpop.eup %2030  ;;  %936 = vmatpush.msra.mxu0 %v916_v44 }
 0x313   : > { %v836_v46 = vmul.f32 %v2031_v45, %v2025_v32  ;;  %v819_v47 = vpop.xlane.xlu0 %818 }
 0x314   : > { %2032 = vrcp.f32 %v819_v47 }
 0x315   : > { %1868 = vmatmul.msk.f32.vlgmr.msra.gmra.mxu0 %vm690_vm2, %v836_v46  ;;  %2034 = vrcp.f32 %v825_v42 }
 0x319   : > { %v822_v51 = vpop.xlane.xlu1 %821 }
 0x31a   : > { %v2033_v48 = vpop.eup %2032  ;;  %2036 = vrcp.f32 %v822_v51 }
 0x31b   : > { %v833_v50 = vmul.f32 %v2033_v48, %v2027_v36  ;;  %v2035_v52 = vpop.eup %2034 }
 0x31c   : > { %v835_v58 = vmul.f32 %v2035_v52, %v2023_v29 }
 0x320   : > { %v2037_v53 = vpop.eup %2036 }
 0x321   : > { %v834_v57 = vmul.f32 %v2037_v53, %v2029_v39 }
 0x326   : > { %v838_v49 = vpop.permute.xlu0 %837 }
 0x327   : > { %858 = vmatpush.msrb.mxu1 %v838_v49 }
 0x328   : > { %1865 = vmatmul.msk.f32.vlgmr.msrb.gmra.mxu1 %vm690_vm2, %v833_v50 }
 0x329   : > { %978 = vmatpush.msra.mxu1 %v648_v62 }
 0x32b   : > { %979 = vmatpush.msra.mxu1 %v647_v63 }
 0x32d   : > { %980 = vmatpush.msra.mxu1 %v646_v0 }
 0x32f   : > { %981 = vmatpush.msra.mxu1 %v645_v1 }
 0x331   : > { %v2002_v54 = vpop.permute.xlu1 %2001 }
 0x332   : > { %v2003_v55 = vunpack.i.l.bf16 %v2002_v54  ;;  %v2004_v56 = vunpack.i.h.bf16 %v2002_v54 }
 0x334   : > { %884 = vmatpush.msrb.mxu2 %v2003_v55  ;;  %910 = vmatpush.msrb.mxu3 %v2004_v56 }
 0x335   : > { %1866 = vmatmul.msk.f32.vlgmr.msrb.gmra.mxu2 %vm690_vm2, %v834_v57  ;;  %1867 = vmatmul.msk.f32.vlgmr.msrb.gmra.mxu3 %vm690_vm2, %v835_v58 }
 0x336   : > { %1016 = vmatpush.msra.mxu2 %v991_v11 }
 0x338   : > { %1017 = vmatpush.msra.mxu2 %v990_v12 }
 0x33a   : > { %1018 = vmatpush.msra.mxu2 %v989_v13 }
 0x33c   : > { %1019 = vmatpush.msra.mxu2 %v988_v14 }
 0x392   : > { %v938_v61 = vpop.f32.mrf.mxu0 }
 0x3a5   : > { %v860_v3 = vpop.f32.mrf.mxu1 }
 0x3b8   : > { %v886_v59 = vpop.f32.mrf.mxu2  ;;  %v912_v60 = vpop.f32.mrf.mxu3 }
 0x3b9   : > { %942 = vrot.lane.b32.xlu1 %v886_v59, %s2353_s15  ;;  %946 = vrot.lane.b32.xlu2 %v912_v60, %s2354_s4 }
 0x3c1   : > { %950 = vrot.lane.b32.xlu1 %v938_v61, %s2355_s29 }
 0x413   : > { %v947_v6 = vpop.permute.xlu2 %946 }
 0x42b   : > { %v943_v2 = vpop.permute.xlu1 %942 }
 0x42c   : > { %v953_v4 = vsel %vm690_vm2, %v860_v3, %v943_v2 }
 0x42d   : > { %v955_v8 = vsel %vm954_vm3, %v953_v4, %v947_v6 }
 0x433   : > { %v951_v7 = vpop.permute.xlu1 %950 }
 0x434   : > { %v957_v9 = vsel %vm956_vm4, %v955_v8, %v951_v7 }
 0x435   : > { %v958_v10 = vadd.f32 %v957_v9, %v2540_v5 }
 0x437   : > { %1869 = vmatmul.msk.f32.vlgmr.msra.gmra.mxu1 %vm962_vm5, %v958_v10 }
 0x4b4   : > { %v983_v16 = vpop.f32.mrf.mxu1 }
 0x4b5   : > { %v984_v17 = vadd.f32 %v2016_v15, %v983_v16  ;;  %v996_v15 = vld [vmem:[#allocation10 + $0x18] sm:$0xff]  ;;  %v995_v16 = vld [vmem:[#allocation10 + $0x10] sm:$0xff] }
 0x4b7   : > { %v986_v18 = vmax.f32 %v984_v17, 0.0  ;;  %v994_v17 = vld [vmem:[#allocation10 + $0x8] sm:$0xff] }
 0x4b9   : > { %v987_v19 = vadd.f32 %v986_v18, %v958_v10  ;;  %v993_v18 = vld [vmem:[#allocation10] sm:$0xff] }
 0x4bb   : > { %1870 = vmatmul.msk.f32.vlgmr.msra.gmra.mxu2 %vm962_vm5, %v987_v19 }
 0x53e   : > { %v1021_v21 = vpop.f32.mrf.mxu2 }
 0x53f   : > { %v2604_v5 = vadd.f32 %v2017_v20, %v1021_v21 }
 0x541   : > { %1027 = vrot.lane.b32.xlu1 %v2604_v5, %s2350_s8  ;;  %1025 = vrot.lane.b32.xlu2 %v2604_v5, %s2349_s19 }
 0x542   : > { %1029 = vrot.lane.b32.xlu0 %v2604_v5, %s2348_s0 }
 0x59b   : > { %v1026_v22 = vpop.permute.xlu2 %1025 }
 0x59c   : > { %1057 = vrot.lane.b32.xlu2 %v1026_v22, %s2351_s18 }
 0x5b3   : > { %v1028_v23 = vpop.permute.xlu1 %1027 }
 0x5b4   : > { %v1030_v24 = vpop.permute.xlu0 %1029  ;;  %1083 = vrot.lane.b32.xlu1 %v1028_v23, %s2351_s18 }
 0x5b5   : > { %1109 = vrot.lane.b32.xlu0 %v1030_v24, %s2351_s18  ;;  %v2005_v57 = vpack.i.bf16 %v1026_v22, %v1030_v24 }
 0x5bd   : > { %1031 = vrot.lane.b32.xlu0 %v2604_v5, %s2351_s18 }
 0x5f6   : > { %v1058_v25 = vpop.permute.xlu2 %1057 }
 0x5f7   : > { %1873 = vmatpush.xpose.msk.msrb.mxu0 %vm690_vm2, %v1058_v25 }
 0x5fa   : > { %1874 = vmatmul.msk.f32.vlgmr.msrb.gmra.mxu0 %vm690_vm2, %v1026_v22 }
 0x626   : > { %v1084_v26 = vpop.permute.xlu1 %1083 }
 0x627   : > { %v1110_v27 = vpop.permute.xlu0 %1109  ;;  %1875 = vmatpush.xpose.msk.msrb.mxu1 %vm690_vm2, %v1084_v26 }
 0x628   : > { %1877 = vmatpush.xpose.msk.msrb.mxu2 %vm690_vm2, %v1110_v27  ;;  %v1331_v27 = vld [vmem:[%s2742_s10 + $0x18] sm:$0xff] }
 0x62a   : > { %1876 = vmatmul.msk.f32.vlgmr.msrb.gmra.mxu1 %vm690_vm2, %v1028_v23 }
 0x62b   : > { %1878 = vmatmul.msk.f32.vlgmr.msrb.gmra.mxu2 %vm690_vm2, %v1030_v24 }
 0x62f   : > { %v1032_v28 = vpop.permute.xlu0 %1031 }
 0x630   : > { %1871 = vmatpush.xpose.msk.msra.mxu3 %vm690_vm2, %v1032_v28  ;;  %v1330_v28 = vld [vmem:[%s2742_s10 + $0x10] sm:$0xff] }
 0x633   : > { %1872 = vmatmul.msk.f32.vlgmr.msra.gmra.mxu3 %vm690_vm2, %v2604_v5 }
 0x677   : > { %v1080_v29 = vpop.f32.mrf.mxu0 }
 0x678   : > { %v1138_v30 = vsel %vm690_vm2, %v1080_v29, -inf }
 0x679   : > { %1139 = vmax.xlane.f32.xlu1 %v1138_v30  ;;  %v2662_v30 = vld [vmem:[#allocation13] sm:$0xf] }
 0x6a7   : > { %v1106_v31 = vpop.f32.mrf.mxu1 }
 0x6a8   : > { %v1141_v32 = vsel %vm690_vm2, %v1106_v31, -inf }
 0x6a9   : > { %1142 = vmax.xlane.f32.xlu0 %v1141_v32 }
 0x6ae   : > { %v1132_v33 = vpop.f32.mrf.mxu2 }
 0x6af   : > { %v1144_v34 = vsel %vm690_vm2, %v1132_v33, -inf }
 0x6b0   : > { %1145 = vmax.xlane.f32.xlu2 %v1144_v34 }
 0x6b6   : > { %v1054_v35 = vpop.f32.mrf.mxu3 }
 0x6b7   : > { %v1135_v36 = vsel %vm690_vm2, %v1054_v35, -inf }
 0x6b8   : > { %1136 = vmax.xlane.f32.xlu2 %v1135_v36  ;;  %v2019_v36 = vld [vmem:[%s2743_s11] ss:$0 sm:$0xff] }
 0x6ec   : > { %v1140_v37 = vpop.xlane.xlu1 %1139 }
 0x6ed   : > { %v1148_v38 = vsub.f32 %v1080_v29, %v1140_v37  ;;  %v1329_v29 = vld [vmem:[%s2742_s10 + $0x8] sm:$0xff] }
 0x6ef   : > { %v1153_v39 = vmul.f32 1.442695, %v1148_v38 }
 0x6f1   : > { %2038 = vpow2.f32 %v1153_v39 }
 0x6f7   : > { %v2039_v40 = vpop.eup %2038 }
 0x6f8   : > { %v1162_v41 = vsel %vm690_vm2, %v2039_v40, 0.0 }
 0x6f9   : > { %1163 = vadd.xlane.f32.xlu0 %v1162_v41 }
 0x70d   : > { %1231 = vrot.lane.b32.xlu0 %v1028_v23, %s2352_s22 }
 0x71c   : > { %v1143_v42 = vpop.xlane.xlu0 %1142 }
 0x71d   : > { %v1149_v43 = vsub.f32 %v1106_v31, %v1143_v42  ;;  %v2018_v31 = vld [vmem:[#allocation11] ss:$0 sm:$0xff] }
 0x71f   : > { %v1155_v44 = vmul.f32 1.442695, %v1149_v43 }
 0x721   : > { %2040 = vpow2.f32 %v1155_v44 }
 0x723   : > { %v1146_v45 = vpop.xlane.xlu2 %1145 }
 0x724   : > { %v1150_v46 = vsub.f32 %v1132_v33, %v1146_v45 }
 0x726   : > { %v1157_v47 = vmul.f32 1.442695, %v1150_v46 }
 0x727   : > { %v2041_v48 = vpop.eup %2040 }
 0x728   : > { %2042 = vpow2.f32 %v1157_v47  ;;  %v1165_v49 = vsel %vm690_vm2, %v2041_v48, 0.0 }
 0x729   : > { %1166 = vadd.xlane.f32.xlu2 %v1165_v49 }
 0x72b   : > { %v1137_v50 = vpop.xlane.xlu2 %1136 }
 0x72c   : > { %v1147_v51 = vsub.f32 %v1054_v35, %v1137_v50 }
 0x72e   : > { %v2043_v52 = vpop.eup %2042  ;;  %v1151_v53 = vmul.f32 1.442695, %v1147_v51 }
 0x72f   : > { %v1168_v54 = vsel %vm690_vm2, %v2043_v52, 0.0 }
 0x730   : > { %2044 = vpow2.f32 %v1151_v53  ;;  %1169 = vadd.xlane.f32.xlu1 %v1168_v54 }
 0x736   : > { %v2045_v55 = vpop.eup %2044 }
 0x737   : > { %v1159_v56 = vsel %vm690_vm2, %v2045_v55, 0.0 }
 0x738   : > { %1160 = vadd.xlane.f32.xlu2 %v1159_v56 }
 0x749   : > { %2006 = vrot.lane.b32.xlu1 %v2005_v57, %s2352_s22 }
 0x750   : > { %1179 = vrot.lane.b32.xlu2 %v2604_v5, %s2352_s22 }
 0x76c   : > { %v1164_v58 = vpop.xlane.xlu0 %1163 }
 0x77f   : > { %v1232_v59 = vpop.permute.xlu0 %1231 }
 0x780   : > { %1252 = vmatpush.msra.mxu1 %v1232_v59 }
 0x79c   : > { %v1167_v60 = vpop.xlane.xlu2 %1166 }
 0x79d   : > { %2046 = vrcp.f32 %v1167_v60 }
 0x7a3   : > { %v2047_v61 = vpop.eup %2046  ;;  %v1170_v0 = vpop.xlane.xlu1 %1169 }
 0x7a4   : > { %v1177_v62 = vmul.f32 %v2047_v61, %v2041_v48 }
 0x7a6   : > { %1881 = vmatmul.msk.f32.vlgmr.msra.gmra.mxu1 %vm690_vm2, %v1177_v62 }
 0x7ab   : > { %v1161_v63 = vpop.xlane.xlu2 %1160 }
 0x7ac   : > { %2048 = vrcp.f32 %v1161_v63 }
 0x7ad   : > { %2050 = vrcp.f32 %v1164_v58 }
 0x7ae   : > { %2052 = vrcp.f32 %v1170_v0 }
 0x7b2   : > { %v2049_v1 = vpop.eup %2048 }
 0x7b3   : > { %v1175_v2 = vmul.f32 %v2049_v1, %v2045_v55  ;;  %v1180_v3 = vpop.permute.xlu2 %1179  ;;  %v2051_v4 = vpop.eup %2050 }
 0x7b4   : > { %1200 = vmatpush.msrb.mxu3 %v1180_v3  ;;  %v2053_v6 = vpop.eup %2052  ;;  %v1176_v10 = vmul.f32 %v2051_v4, %v2039_v40 }
 0x7b5   : > { %1879 = vmatmul.msk.f32.vlgmr.msrb.gmra.mxu3 %vm690_vm2, %v1175_v2  ;;  %v1178_v11 = vmul.f32 %v2053_v6, %v2043_v52 }
 0x7b6   : > { %1317 = vmatpush.msra.mxu3 %v996_v15 }
 0x7b8   : > { %1318 = vmatpush.msra.mxu3 %v995_v16 }
 0x7ba   : > { %1319 = vmatpush.msra.mxu3 %v994_v17 }
 0x7bb   : > { %v2007_v7 = vpop.permute.xlu1 %2006 }
 0x7bc   : > { %v2009_v8 = vunpack.i.h.bf16 %v2007_v7  ;;  %v2008_v9 = vunpack.i.l.bf16 %v2007_v7  ;;  %1320 = vmatpush.msra.mxu3 %v993_v18 }
 0x7be   : > { %1226 = vmatpush.msra.mxu0 %v2009_v8  ;;  %1278 = vmatpush.msra.mxu2 %v2008_v9 }
 0x7bf   : > { %1880 = vmatmul.msk.f32.vlgmr.msra.gmra.mxu0 %vm690_vm2, %v1176_v10  ;;  %1882 = vmatmul.msk.f32.vlgmr.msra.gmra.mxu2 %vm690_vm2, %v1178_v11 }
 0x7c0   : > { %1356 = vmatpush.msrb.mxu0 %v1331_v27 }
 0x7c2   : > { %1357 = vmatpush.msrb.mxu0 %v1330_v28 }
 0x7c4   : > { %1358 = vmatpush.msrb.mxu0 %v1329_v29 }
 0x823   : > { %v1254_v12 = vpop.f32.mrf.mxu1 }
 0x824   : > { %1288 = vrot.lane.b32.xlu1 %v1254_v12, %s2354_s4 }
 0x838   : > { %v1202_v20 = vpop.f32.mrf.mxu3 }
 0x83c   : > { %v1228_v13 = vpop.f32.mrf.mxu0 }
 0x83d   : > { %1284 = vrot.lane.b32.xlu0 %v1228_v13, %s2353_s15 }
 0x842   : > { %v1280_v14 = vpop.f32.mrf.mxu2 }
 0x845   : > { %1292 = vrot.lane.b32.xlu0 %v1280_v14, %s2355_s29 }
 0x84d   : > { %1365 = vrot.lane.b32.xlu0 %v2662_v30, %s2349_s19 }
 0x855   : > { %1369 = vrot.lane.b32.xlu0 %v2662_v30, %s2348_s0 }
 0x896   : > { %v1289_v22 = vpop.permute.xlu1 %1288 }
 0x8af   : > { %v1285_v19 = vpop.permute.xlu0 %1284 }
 0x8b0   : > { %v1295_v21 = vsel %vm690_vm2, %v1202_v20, %v1285_v19 }
 0x8b1   : > { %v1296_v23 = vsel %vm954_vm3, %v1295_v21, %v1289_v22 }
 0x8b7   : > { %v1293_v24 = vpop.permute.xlu0 %1292 }
 0x8b8   : > { %v1297_v25 = vsel %vm956_vm4, %v1296_v23, %v1293_v24 }
 0x8b9   : > { %v1298_v26 = vadd.f32 %v1297_v25, %v2604_v5  ;;  %v1328_v5 = vld [vmem:[%s2742_s10] sm:$0xff] }
 0x8ba   : > { %1359 = vmatpush.msrb.mxu0 %v1328_v5 }
 0x8bb   : > { %1883 = vmatmul.msk.f32.vlgmr.msra.gmra.mxu3 %vm962_vm5, %v1298_v26 }
 0x8bf   : > { %v1366_v39 = vpop.permute.xlu0 %1365 }
 0x8c7   : > { %v1370_v42 = vpop.permute.xlu0 %1369 }
 0x93e   : > { %v1322_v32 = vpop.f32.mrf.mxu3 }
 0x93f   : > { %v1323_v33 = vadd.f32 %v2018_v31, %v1322_v32  ;;  %v1336_v31 = vld [vmem:[#allocation14 + $0x18] sm:$0xff]  ;;  %v1335_v32 = vld [vmem:[#allocation14 + $0x10] sm:$0xff] }
 0x941   : > { %v1325_v34 = vmax.f32 %v1323_v33, 0.0  ;;  %v1334_v33 = vld [vmem:[#allocation14 + $0x8] sm:$0xff] }
 0x943   : > { %v1326_v35 = vadd.f32 %v1325_v34, %v1298_v26  ;;  %v1333_v34 = vld [vmem:[#allocation14] sm:$0xff] }
 0x945   : > { %1884 = vmatmul.msk.f32.vlgmr.msrb.gmra.mxu0 %vm962_vm5, %v1326_v35 }
 0x9c2   : > { %v1361_v37 = vpop.f32.mrf.mxu0 }
 0x9c3   : > { %v1362_v38 = vadd.f32 %v2019_v36, %v1361_v37 }
 0x9c5   : > { %1374 = vrot.lane.b32.xlu2 %v1362_v38, %s2350_s8  ;;  %1372 = vrot.lane.b32.xlu1 %v1362_v38, %s2349_s19 }
 0x9c6   : > { %1885 = vmatpush.xpose.msk.msrb.mxu1 %vm690_vm2, %v1362_v38 }
 0x9c9   : > { %1886 = vmatmul.msk.f32.vlgmr.msrb.gmra.mxu1 %vm690_vm2, %v2662_v30 }
 0x9cd   : > { %1376 = vrot.lane.b32.xlu2 %v1362_v38, %s2348_s0  ;;  %1367 = vrot.lane.b32.xlu1 %v2662_v30, %s2350_s8 }
 0xa1f   : > { %v1375_v40 = vpop.permute.xlu2 %1374 }
 0xa20   : > { %1889 = vmatpush.xpose.msk.msrb.mxu3 %vm690_vm2, %v1375_v40 }
 0xa27   : > { %v1377_v41 = vpop.permute.xlu2 %1376 }
 0xa28   : > { %1891 = vmatpush.xpose.msk.msra.mxu0 %vm690_vm2, %v1377_v41 }
 0xa2b   : > { %1892 = vmatmul.msk.f32.vlgmr.msra.gmra.mxu0 %vm690_vm2, %v1370_v42 }
 0xa37   : > { %v1373_v43 = vpop.permute.xlu1 %1372 }
 0xa38   : > { %v2010_v44 = vpack.i.bf16 %v1375_v40, %v1373_v43  ;;  %1887 = vmatpush.xpose.msk.msrb.mxu2 %vm690_vm2, %v1373_v43  ;;  %v1670_v43 = vld [vmem:[%s2746_s14 + $0x18] sm:$0xff] }
 0xa3b   : > { %1888 = vmatmul.msk.f32.vlgmr.msrb.gmra.mxu2 %vm690_vm2, %v1366_v39 }
 0xa3f   : > { %v1368_v45 = vpop.permute.xlu1 %1367 }
 0xa40   : > { %1890 = vmatmul.msk.f32.vlgmr.msrb.gmra.mxu3 %vm690_vm2, %v1368_v45  ;;  %v1668_v45 = vld [vmem:[%s2746_s14 + $0x8] sm:$0xff] }
 0xa46   : > { %v1399_v50 = vpop.f32.mrf.mxu1 }
 0xa47   : > { %v1475_v53 = vsel %vm1474_vm6, %v1399_v50, -inf }
 0xaa8   : > { %v1471_v46 = vpop.f32.mrf.mxu0 }
 0xaa9   : > { %v1484_v47 = vsel %vm1474_vm6, %v1471_v46, -inf }
 0xaaa   : > { %1485 = vmax.xlane.f32.xlu0 %v1484_v47 }
 0xabe   : > { %v1423_v48 = vpop.f32.mrf.mxu2 }
 0xabf   : > { %v1478_v49 = vsel %vm1474_vm6, %v1423_v48, -inf }
 0xac0   : > { %1479 = vmax.xlane.f32.xlu1 %v1478_v49 }
 0xac3   : > { %v1447_v51 = vpop.f32.mrf.mxu3 }
 0xac4   : > { %v1481_v52 = vsel %vm1474_vm6, %v1447_v51, -inf }
 0xac5   : > { %1482 = vmax.xlane.f32.xlu2 %v1481_v52 }
 0xac8   : > { %1476 = vmax.xlane.f32.xlu1 %v1475_v53 }
 0xb1d   : > { %v1486_v54 = vpop.xlane.xlu0 %1485 }
 0xb1e   : > { %v1490_v55 = vsub.f32 %v1471_v46, %v1486_v54  ;;  %v2020_v46 = vld [vmem:[%s2745_s13] ss:$0 sm:$0xff] }
 0xb20   : > { %v1497_v56 = vmul.f32 1.442695, %v1490_v55 }
 0xb22   : > { %2054 = vpow2.f32 %v1497_v56 }
 0xb28   : > { %v2055_v57 = vpop.eup %2054 }
 0xb29   : > { %v1508_v58 = vsel %vm1474_vm6, %v2055_v57, 0.0 }
 0xb2a   : > { %1509 = vadd.xlane.f32.xlu1 %v1508_v58 }
 0xb33   : > { %v1480_v59 = vpop.xlane.xlu1 %1479 }
 0xb34   : > { %v1488_v60 = vsub.f32 %v1423_v48, %v1480_v59 }
 0xb36   : > { %v1493_v61 = vmul.f32 1.442695, %v1488_v60 }
 0xb38   : > { %2056 = vpow2.f32 %v1493_v61  ;;  %v1483_v62 = vpop.xlane.xlu2 %1482 }
 0xb39   : > { %v1489_v63 = vsub.f32 %v1447_v51, %v1483_v62  ;;  %v2021_v51 = vld [vmem:[#allocation2] ss:$0 sm:$0xff] }
 0xb3b   : > { %v1495_v0 = vmul.f32 1.442695, %v1489_v63  ;;  %v1477_v1 = vpop.xlane.xlu1 %1476 }
 0xb3c   : > { %v1487_v2 = vsub.f32 %v1399_v50, %v1477_v1 }
 0xb3d   : > { %2058 = vpow2.f32 %v1495_v0 }
 0xb3e   : > { %v2057_v3 = vpop.eup %2056  ;;  %v1491_v4 = vmul.f32 1.442695, %v1487_v2 }
 0xb3f   : > { %v1502_v6 = vsel %vm1474_vm6, %v2057_v3, 0.0 }
 0xb40   : > { %2060 = vpow2.f32 %v1491_v4  ;;  %1503 = vadd.xlane.f32.xlu2 %v1502_v6 }
 0xb43   : > { %v2059_v7 = vpop.eup %2058 }
 0xb44   : > { %v1505_v8 = vsel %vm1474_vm6, %v2059_v7, 0.0 }
 0xb45   : > { %1506 = vadd.xlane.f32.xlu0 %v1505_v8 }
 0xb46   : > { %v2061_v9 = vpop.eup %2060 }
 0xb47   : > { %v1499_v10 = vsel %vm1474_vm6, %v2061_v9, 0.0 }
 0xb48   : > { %1500 = vadd.xlane.f32.xlu1 %v1499_v10 }
 0xb58   : > { %2011 = vrot.lane.b32.xlu2 %v2010_v44, %s2351_s18  ;;  %v1669_v44 = vld [vmem:[%s2746_s14 + $0x10] sm:$0xff] }
 0xb59   : > { %1597 = vrot.lane.b32.xlu0 %v1377_v41, %s2351_s18 }
 0xb61   : > { %1519 = vrot.lane.b32.xlu1 %v1362_v38, %s2351_s18 }
 0xb9d   : > { %v1510_v19 = vpop.xlane.xlu1 %1509 }
 0xbb3   : > { %v1504_v11 = vpop.xlane.xlu2 %1503 }
 0xbb4   : > { %2062 = vrcp.f32 %v1504_v11 }
 0xbb8   : > { %v1507_v12 = vpop.xlane.xlu0 %1506 }
 0xbb9   : > { %2064 = vrcp.f32 %v1507_v12 }
 0xbba   : > { %v2063_v13 = vpop.eup %2062  ;;  %2066 = vrcp.f32 %v1510_v19 }
 0xbbb   : > { %v2012_v14 = vpop.permute.xlu2 %2011  ;;  %v1516_v17 = vmul.f32 %v2063_v13, %v2057_v3  ;;  %v1501_v21 = vpop.xlane.xlu1 %1500 }
 0xbbc   : > { %v2014_v15 = vunpack.i.h.bf16 %v2012_v14  ;;  %v2013_v16 = vunpack.i.l.bf16 %v2012_v14  ;;  %2068 = vrcp.f32 %v1501_v21 }
 0xbbe   : > { %1566 = vmatpush.msra.mxu2 %v2013_v16  ;;  %1592 = vmatpush.msra.mxu3 %v2014_v15 }
 0xbbf   : > { %v2065_v18 = vpop.eup %2064  ;;  %1894 = vmatmul.msk.f32.vlgmr.msra.gmra.mxu2 %vm690_vm2, %v1516_v17 }
 0xbc0   : > { %v1517_v20 = vmul.f32 %v2065_v18, %v2059_v7  ;;  %v2067_v22 = vpop.eup %2066  ;;  %1690 = vmatpush.msrb.mxu2 %v1670_v43 }
 0xbc1   : > { %v1518_v23 = vmul.f32 %v2067_v22, %v2055_v57 }
 0xbc2   : > { %1895 = vmatmul.msk.f32.vlgmr.msra.gmra.mxu3 %vm690_vm2, %v1517_v20  ;;  %v2069_v25 = vpop.eup %2068  ;;  %1691 = vmatpush.msrb.mxu2 %v1669_v44 }
 0xbc3   : > { %v1515_v26 = vmul.f32 %v2069_v25, %v2061_v9 }
 0xbc4   : > { %1692 = vmatpush.msrb.mxu2 %v1668_v45 }
 0xbcb   : > { %v1598_v24 = vpop.permute.xlu0 %1597 }
 0xbcc   : > { %1618 = vmatpush.msrb.mxu0 %v1598_v24 }
 0xbcd   : > { %1896 = vmatmul.msk.f32.vlgmr.msrb.gmra.mxu0 %vm690_vm2, %v1518_v23 }
 0xbd3   : > { %v1520_v27 = vpop.permute.xlu1 %1519 }
 0xbd4   : > { %1540 = vmatpush.msra.mxu1 %v1520_v27 }
 0xbd5   : > { %1893 = vmatmul.msk.f32.vlgmr.msra.gmra.mxu1 %vm690_vm2, %v1515_v26 }
 0xbd6   : > { %1657 = vmatpush.msrb.mxu1 %v1336_v31 }
 0xbd8   : > { %1658 = vmatpush.msrb.mxu1 %v1335_v32 }
 0xbda   : > { %1659 = vmatpush.msrb.mxu1 %v1334_v33 }
 0xbdc   : > { %1660 = vmatpush.msrb.mxu1 %v1333_v34 }
 0xc42   : > { %v1568_v28 = vpop.f32.mrf.mxu2 }
 0xc43   : > { %1624 = vrot.lane.b32.xlu0 %v1568_v28, %s2353_s15 }
 0xc45   : > { %v1594_v29 = vpop.f32.mrf.mxu3 }
 0xc46   : > { %1628 = vrot.lane.b32.xlu2 %v1594_v29, %s2354_s4 }
 0xc4a   : > { %v1620_v5 = vpop.f32.mrf.mxu0 }
 0xc4b   : > { %1632 = vrot.lane.b32.xlu0 %v1620_v5, %s2355_s29 }
 0xc52   : > { %v1542_v36 = vpop.f32.mrf.mxu1 }
 0xca0   : > { %v1629_v38 = vpop.permute.xlu2 %1628 }
 0xcb5   : > { %v1625_v35 = vpop.permute.xlu0 %1624 }
 0xcb6   : > { %v1635_v37 = vsel %vm690_vm2, %v1542_v36, %v1625_v35 }
 0xcb7   : > { %v1636_v39 = vsel %vm954_vm3, %v1635_v37, %v1629_v38 }
 0xcbd   : > { %v1633_v40 = vpop.permute.xlu0 %1632 }
 0xcbe   : > { %v1637_v41 = vsel %vm956_vm4, %v1636_v39, %v1633_v40 }
 0xcbf   : > { %v1638_v42 = vadd.f32 %v1637_v41, %v2662_v30  ;;  %v1667_v30 = vld [vmem:[%s2746_s14] sm:$0xff] }
 0xcc0   : > { %1693 = vmatpush.msrb.mxu2 %v1667_v30 }
 0xcc1   : > { %1897 = vmatmul.msk.f32.vlgmr.msrb.gmra.mxu1 %vm962_vm5, %v1638_v42 }
 0xd3e   : > { %v1662_v47 = vpop.f32.mrf.mxu1 }
 0xd3f   : > { %v1663_v48 = vadd.f32 %v2020_v46, %v1662_v47 }
 0xd41   : > { %v1665_v49 = vmax.f32 %v1663_v48, 0.0 }
 0xd43   : > { %v1666_v50 = vadd.f32 %v1665_v49, %v1638_v42 }
 0xd45   : > { %1898 = vmatmul.msk.f32.vlgmr.msrb.gmra.mxu2 %vm962_vm5, %v1666_v50 }
 0xdc8   : > { %v1695_v52 = vpop.f32.mrf.mxu2 }
 0xdc9   : > { %v1696_v53 = vadd.f32 %v2021_v51, %v1695_v52 }
 0xdcb   : > { %1699 = vst.msk [vmem:[%s641_s17] sm:$0xf] %vm1698_vm7, %v1696_v53 }
 0xdcc PF: > { %s33_s23 = sadd.s32 1, %s2336_s23  }
 0xdcd   : > { %p30_p7 = scmp.ge.s32.totalorder %s33_s23, 4  }
 0xdcf   :  { %32 = sbr.rel (!%p30_p7) target bundleno = 10 (0xa), region = 147 }
 0xdd4   :  { %1719 = vsyncpa [#allocation4], 1 }
 0xdd5   :  { %1721 = vsyncpa [#allocation4 + $0x1], 1 }
 0xdd6   :  { %1722 = vsyncpa [#allocation6], 1 }
 0xdd7   :  { %1723 = vsyncpa [#allocation9], 1 }
 0xdd8   :  { %1724 = vsyncpa [#allocation12], 1 }
 0xdd9   :  { %1725 = vsyncpa [#allocation15], 1 }

</bundles_post_ra>
